<compile_context>
chip_gen: v7x
topology: tpu7x:2x2x1
jax: 0.10.0
libtpu: 0.0.40
codegen_flags: <defaults>
</compile_context>

<pallas_src>
import numpy as np
import jax
import jax.numpy as jnp
from jax.experimental import pallas as pl
from jax.experimental.pallas import tpu as pltpu

N_EMBED = 128                       # n_atom_embed = n_rdf_embed = n_bdf_embed
VMEM_LIMIT_BYTES = 32 * 1024 * 1024  # raises v5e's 16 MiB default, fits v7x


def _round_up(x, m):
    return (x + m - 1) // m * m


def _row_tiling(n, max_tile=512):
    """128-granular row padding; tile is the largest of (max_tile,256,128) that
    divides n_pad.  Small inputs are padded only to a multiple of 8."""
    if n <= 128:
        n_pad = _round_up(max(n, 8), 8)
        return n_pad, n_pad
    n_pad = _round_up(n, 128)
    for t in (max_tile, 256, 128):
        if t <= max_tile and n_pad % t == 0:
            return t, n_pad
    return 128, n_pad


# ----------------------------- in-kernel math helpers -----------------------------

def _module_math(x, xd, oh, q_r, q_b,
                 wd_r, sc_r, sh_r, wd_b, sc_b, sh_b,
                 wm_a, wm_b, bm, cd):
    """ModuleDistLayers for one row tile (gather-back already folded into q_r/q_b)."""
    f32 = jnp.float32
    h_r = (jnp.dot(xd[:, :N_EMBED], wd_r, preferred_element_type=f32)
           + jnp.dot(oh, q_r, preferred_element_type=f32))
    x1 = jnp.maximum(h_r * sc_r + sh_r + x, 0.0)
    h_b = (jnp.dot(xd[:, N_EMBED:], wd_b, preferred_element_type=f32)
           + jnp.dot(oh, q_b, preferred_element_type=f32))
    x2 = jnp.maximum(h_b * sc_b + sh_b + x, 0.0)
    y = (jnp.dot(x1.astype(cd), wm_a, preferred_element_type=f32)
         + jnp.dot(x2.astype(cd), wm_b, preferred_element_type=f32)
         + bm)
    return jnp.maximum(y, 0.0)


def _pool_epilogue(acc, inv_a, inv_e, wp_r, wp_b, qr_ref, qb_ref):
    """mean + relu of the pooled sums, folded through the next layer's fc1
    pooled-row weights -> gather tables q_r/q_b (written to resident outputs)."""
    f32 = jnp.float32
    cd = wp_r.dtype
    s = qr_ref.shape[0] // 2
    pa = jnp.maximum(acc[:, :N_EMBED] * inv_a, 0.0).astype(cd)
    pe = jnp.maximum(acc[:, N_EMBED:] * inv_e, 0.0).astype(cd)
    qr_ref[:s, :] = jnp.dot(pa, wp_r[:N_EMBED], preferred_element_type=f32).astype(qr_ref.dtype)
    qr_ref[s:, :] = jnp.dot(pe, wp_r[N_EMBED:], preferred_element_type=f32).astype(qr_ref.dtype)
    qb_ref[:s, :] = jnp.dot(pa, wp_b[:N_EMBED], preferred_element_type=f32).astype(qb_ref.dtype)
    qb_ref[s:, :] = jnp.dot(pe, wp_b[N_EMBED:], preferred_element_type=f32).astype(qb_ref.dtype)


# ----------------------------- kernel 1: embed + pool(dl1) -----------------------------

def _embed_pool_kernel(feat_ref, w_ref, b_ref,
                       ohT_a_ref, ohT_e_ref, inv_a_ref, inv_e_ref,
                       wp_r_ref, wp_b_ref,
                       h_ref, xd_ref, qr_ref, qb_ref, acc_ref):
    i = pl.program_id(0)

    @pl.when(i == 0)
    def _():
        acc_ref[...] = jnp.zeros_like(acc_ref)

    y = jnp.dot(feat_ref[...], w_ref[...], preferred_element_type=jnp.float32) + b_ref[...]
    h = jnp.maximum(y[:, :2 * N_EMBED], 0.0).astype(h_ref.dtype)       # relu
    xd = jnp.clip(y[:, 2 * N_EMBED:], 0.0, 6.0).astype(xd_ref.dtype)   # relu6
    h_ref[...] = h
    xd_ref[...] = xd

    # segment-sums for dist-layer-1's pooled means (reduction over the row axis)
    acc_ref[:, :N_EMBED] += jnp.dot(ohT_a_ref[...], h[:, :N_EMBED],
                                    preferred_element_type=jnp.float32)
    acc_ref[:, N_EMBED:] += jnp.dot(ohT_e_ref[...], h[:, N_EMBED:],
                                    preferred_element_type=jnp.float32)

    @pl.when(i == pl.num_programs(0) - 1)
    def _():
        _pool_epilogue(acc_ref[...], inv_a_ref[...], inv_e_ref[...],
                       wp_r_ref[...], wp_b_ref[...], qr_ref, qb_ref)


def embed_pool(feat, w_big, b_big, ohT_a, ohT_e, inv_a, inv_e, wp_r, wp_b,
               tile_rows, cdtype):
    n_pad, d_in = feat.shape
    s = ohT_a.shape[0]
    d = 2 * N_EMBED

    def _full(shape):
        return pl.BlockSpec(shape, lambda i: (0, 0))

    return pl.pallas_call(
        _embed_pool_kernel,
        out_shape=(jax.ShapeDtypeStruct((n_pad, d), cdtype),
                   jax.ShapeDtypeStruct((n_pad, d), cdtype),
                   jax.ShapeDtypeStruct((2 * s, d), cdtype),
                   jax.ShapeDtypeStruct((2 * s, d), cdtype)),
        grid_spec=pltpu.PrefetchScalarGridSpec(
            num_scalar_prefetch=0,
            grid=(n_pad // tile_rows,),
            in_specs=[
                pl.BlockSpec((tile_rows, d_in), lambda i: (i, 0)),   # [a1|a2|rdf|bdf]
                _full((d_in, 2 * d)),                                # block-diag embed W
                _full((1, 2 * d)),                                   # embed bias
                pl.BlockSpec((s, tile_rows), lambda i: (0, i)),      # one-hot^T atom
                pl.BlockSpec((s, tile_rows), lambda i: (0, i)),      # one-hot^T ele
                _full((s, 1)), _full((s, 1)),                        # 1/count
                _full((d, d)), _full((d, d)),                        # dl1 pooled-row W
            ],
            out_specs=(
                pl.BlockSpec((tile_rows, d), lambda i: (i, 0)),      # h
                pl.BlockSpec((tile_rows, d), lambda i: (i, 0)),      # xd
                pl.BlockSpec((2 * s, d), lambda i: (0, 0)),          # q_r (resident)
                pl.BlockSpec((2 * s, d), lambda i: (0, 0)),          # q_b (resident)
            ),
            scratch_shapes=[pltpu.VMEM((s, d), jnp.float32)],
        ),
        compiler_params=pltpu.CompilerParams(
            dimension_semantics=("arbitrary",),
            vmem_limit_bytes=VMEM_LIMIT_BYTES),
    )(feat, w_big, b_big, ohT_a, ohT_e, inv_a, inv_e, wp_r, wp_b)


# ----------------------------- kernel 2: module(dl1) + pool(dl2) -----------------------------

def _module_pool_kernel(x_ref, xd_ref, oh_ref, qr_in_ref, qb_in_ref,
                        wd_r_ref, sc_r_ref, sh_r_ref,
                        wd_b_ref, sc_b_ref, sh_b_ref,
                        wm_a_ref, wm_b_ref, bm_ref,
                        ohT_a_ref, ohT_e_ref, inv_a_ref, inv_e_ref,
                        wp_r_ref, wp_b_ref,
                        y_ref, qr_out_ref, qb_out_ref, acc_ref):
    i = pl.program_id(0)

    @pl.when(i == 0)
    def _():
        acc_ref[...] = jnp.zeros_like(acc_ref)

    y = _module_math(x_ref[...], xd_ref[...], oh_ref[...],
                     qr_in_ref[...], qb_in_ref[...],
                     wd_r_ref[...], sc_r_ref[...], sh_r_ref[...],
                     wd_b_ref[...], sc_b_ref[...], sh_b_ref[...],
                     wm_a_ref[...], wm_b_ref[...], bm_ref[...],
                     y_ref.dtype)
    y_cd = y.astype(y_ref.dtype)
    y_ref[...] = y_cd

    acc_ref[:, :N_EMBED] += jnp.dot(ohT_a_ref[...], y_cd[:, :N_EMBED],
                                    preferred_element_type=jnp.float32)
    acc_ref[:, N_EMBED:] += jnp.dot(ohT_e_ref[...], y_cd[:, N_EMBED:],
                                    preferred_element_type=jnp.float32)

    @pl.when(i == pl.num_programs(0) - 1)
    def _():
        _pool_epilogue(acc_ref[...], inv_a_ref[...], inv_e_ref[...],
                       wp_r_ref[...], wp_b_ref[...], qr_out_ref, qb_out_ref)


def module_pool(x, xd, oh_both, q_r, q_b, dl,
                ohT_a, ohT_e, inv_a, inv_e, wp_r_next, wp_b_next,
                tile_rows, cdtype):
    n_pad, d = x.shape
    s2 = oh_both.shape[1]
    s = ohT_a.shape[0]

    def _full(shape):
        return pl.BlockSpec(shape, lambda i: (0, 0))

    return pl.pallas_call(
        _module_pool_kernel,
        out_shape=(jax.ShapeDtypeStruct((n_pad, d), cdtype),
                   jax.ShapeDtypeStruct((2 * s, d), cdtype),
                   jax.ShapeDtypeStruct((2 * s, d), cdtype)),
        grid_spec=pltpu.PrefetchScalarGridSpec(
            num_scalar_prefetch=0,
            grid=(n_pad // tile_rows,),
            in_specs=[
                pl.BlockSpec((tile_rows, d), lambda i: (i, 0)),     # x (residual)
                pl.BlockSpec((tile_rows, d), lambda i: (i, 0)),     # [x_rdf | x_bdf]
                pl.BlockSpec((tile_rows, s2), lambda i: (i, 0)),    # [oh_atom | oh_ele]
                _full((2 * s, d)), _full((2 * s, d)),               # q_r, q_b
                _full((N_EMBED, d)), _full((1, d)), _full((1, d)),  # rdf: W_dist, bn scale/shift
                _full((N_EMBED, d)), _full((1, d)), _full((1, d)),  # bdf
                _full((d, d)), _full((d, d)), _full((1, d)),        # module fc1 (x1/x2 rows), bias
                pl.BlockSpec((s, tile_rows), lambda i: (0, i)),     # one-hot^T atom
                pl.BlockSpec((s, tile_rows), lambda i: (0, i)),     # one-hot^T ele
                _full((s, 1)), _full((s, 1)),                       # 1/count
                _full((d, d)), _full((d, d)),                       # next layer pooled-row W
            ],
            out_specs=(
                pl.BlockSpec((tile_rows, d), lambda i: (i, 0)),
                pl.BlockSpec((2 * s, d), lambda i: (0, 0)),
                pl.BlockSpec((2 * s, d), lambda i: (0, 0)),
            ),
            scratch_shapes=[pltpu.VMEM((s, d), jnp.float32)],
        ),
        compiler_params=pltpu.CompilerParams(
            dimension_semantics=("arbitrary",),
            vmem_limit_bytes=VMEM_LIMIT_BYTES),
    )(x, xd, oh_both, q_r, q_b,
      dl["wd_r"], dl["sc_r"], dl["sh_r"],
      dl["wd_b"], dl["sc_b"], dl["sh_b"],
      dl["wm_a"], dl["wm_b"], dl["bm"],
      ohT_a, ohT_e, inv_a, inv_e, wp_r_next, wp_b_next)


# ----------------------------- kernel 3: module(dl2) + graph pool + head -----------------------------

def _module_head_kernel(x_ref, xd_ref, oh_ref, qr_ref, qb_ref,
                        wd_r_ref, sc_r_ref, sh_r_ref,
                        wd_b_ref, sc_b_ref, sh_b_ref,
                        wm_a_ref, wm_b_ref, bm_ref,
                        ohT_g_ref, inv_g_ref, refv_ref,
                        w1h_ref, w1r_ref, b1_ref, w2_ref, b2_ref,
                        o_ref, acc_ref):
    i = pl.program_id(0)
    cd = wm_a_ref.dtype

    @pl.when(i == 0)
    def _():
        acc_ref[...] = jnp.zeros_like(acc_ref)

    y = _module_math(x_ref[...], xd_ref[...], oh_ref[...],
                     qr_ref[...], qb_ref[...],
                     wd_r_ref[...], sc_r_ref[...], sh_r_ref[...],
                     wd_b_ref[...], sc_b_ref[...], sh_b_ref[...],
                     wm_a_ref[...], wm_b_ref[...], bm_ref[...], cd)
    acc_ref[...] += jnp.dot(ohT_g_ref[...], y.astype(cd),
                            preferred_element_type=jnp.float32)

    @pl.when(i == pl.num_programs(0) - 1)
    def _():
        g = acc_ref[...] * inv_g_ref[...]                       # graph mean
        t = (jnp.dot(g.astype(cd), w1h_ref[...], preferred_element_type=jnp.float32)
             + refv_ref[...] * w1r_ref[...] + b1_ref[...])
        t = jnp.maximum(t, 0.0)
        o_ref[...] = (jnp.dot(t.astype(cd), w2_ref[...],
                              preferred_element_type=jnp.float32) + b2_ref[...])


def module_head(x, xd, oh_both, q_r, q_b, dl,
                ohT_g, inv_g, ref_pad, w1h, w1r, b1p, w2p, b2p, tile_rows):
    n_pad, d = x.shape
    s2 = oh_both.shape[1]
    s2q = q_r.shape[0]
    gp = ohT_g.shape[0]
    d1p, d2p = w1h.shape[1], w2p.shape[1]

    def _full(shape):
        return pl.BlockSpec(shape, lambda i: (0, 0))

    return pl.pallas_call(
        _module_head_kernel,
        out_shape=jax.ShapeDtypeStruct((gp, d2p), jnp.float32),
        grid_spec=pltpu.PrefetchScalarGridSpec(
            num_scalar_prefetch=0,
            grid=(n_pad // tile_rows,),
            in_specs=[
                pl.BlockSpec((tile_rows, d), lambda i: (i, 0)),
                pl.BlockSpec((tile_rows, d), lambda i: (i, 0)),
                pl.BlockSpec((tile_rows, s2), lambda i: (i, 0)),
                _full((s2q, d)), _full((s2q, d)),
                _full((N_EMBED, d)), _full((1, d)), _full((1, d)),
                _full((N_EMBED, d)), _full((1, d)), _full((1, d)),
                _full((d, d)), _full((d, d)), _full((1, d)),
                pl.BlockSpec((gp, tile_rows), lambda i: (0, i)),    # one-hot^T graph
                _full((gp, 1)), _full((gp, 1)),                     # 1/count, ref_feat
                _full((d, d1p)), _full((1, d1p)), _full((1, d1p)),  # head fc1
                _full((d1p, d2p)), _full((1, d2p)),                 # head fc2
            ],
            out_specs=pl.BlockSpec((gp, d2p), lambda i: (0, 0)),
            scratch_shapes=[pltpu.VMEM((gp, d), jnp.float32)],
        ),
        compiler_params=pltpu.CompilerParams(
            dimension_semantics=("arbitrary",),
            vmem_limit_bytes=VMEM_LIMIT_BYTES),
    )(x, xd, oh_both, q_r, q_b,
      dl["wd_r"], dl["sc_r"], dl["sh_r"],
      dl["wd_b"], dl["sc_b"], dl["sh_b"],
      dl["wm_a"], dl["wm_b"], dl["bm"],
      ohT_g, inv_g, ref_pad, w1h, w1r, b1p, w2p, b2p)


# ----------------------------- glue / model -----------------------------

def build_segment_mats(idx, s_pad, n_pad):
    """Row one-hot (N_pad,S), transposed one-hot (S,N_pad) and 1/count (S,1).
    Padded rows get index -1 (never match); padded segments get inv=0."""
    n = idx.shape[0]
    idx_pad = jnp.full((n_pad,), -1, jnp.int32).at[:n].set(idx.astype(jnp.int32))
    seg = jnp.arange(s_pad, dtype=jnp.int32)
    oh = (idx_pad[:, None] == seg[None, :]).astype(jnp.float32)
    ohT = (seg[:, None] == idx_pad[None, :]).astype(jnp.float32)
    cnt = ohT.sum(axis=1, keepdims=True)
    inv = jnp.where(cnt > 0.0, 1.0 / jnp.maximum(cnt, 1.0), 0.0)
    return oh, ohT, inv


def bn_fold(bn_params, bias, eps=1e-5):
    """Fold fc bias + eval-mode BatchNorm1d into a per-channel (scale, shift)."""
    gamma, beta, mean, var = bn_params
    scale = gamma / jnp.sqrt(var + eps)
    shift = beta - mean * scale + bias * scale
    return scale.reshape(1, -1), shift.reshape(1, -1)


def _prep_module(p, cd):
    w_r, b_r = p["rdf"]["fc1"]          # (384, 256)
    w_b, b_b = p["bdf"]["fc1"]
    sc_r, sh_r = bn_fold(p["rdf"]["bn1"], b_r)
    sc_b, sh_b = bn_fold(p["bdf"]["bn1"], b_b)
    w_m, b_m = p["fc1"]                 # (512, 256)
    d = 2 * N_EMBED
    return dict(
        wd_r=w_r[:N_EMBED].astype(cd), wp_r=w_r[N_EMBED:].astype(cd),
        sc_r=sc_r, sh_r=sh_r,
        wd_b=w_b[:N_EMBED].astype(cd), wp_b=w_b[N_EMBED:].astype(cd),
        sc_b=sc_b, sh_b=sh_b,
        wm_a=w_m[:d].astype(cd), wm_b=w_m[d:].astype(cd),
        bm=b_m.reshape(1, -1))


def dist_nn_forward(params, atom_feat, rdf_feat, bdf_feat, atom_idx, ele_idx,
                    graph_idx, ref_feat, num_atoms, num_ele, num_graphs, n_af,
                    use_bf16=True, max_tile_rows=512):
    cd = jnp.bfloat16 if use_bf16 else jnp.float32
    f32 = jnp.float32
    n = atom_feat.shape[0]
    n_rf, n_bf = rdf_feat.shape[1], bdf_feat.shape[1]
    tile_rows, n_pad = _row_tiling(n, max_tile_rows)

    # segment matrices (bf16 one-hots: values are exact 0/1)
    s_pad = _round_up(max(num_atoms, num_ele, 16), 16)
    g_pad = _round_up(max(num_graphs, 16), 16)
    oh_atom, ohT_atom, inv_atom = build_segment_mats(atom_idx, s_pad, n_pad)
    oh_ele, ohT_ele, inv_ele = build_segment_mats(ele_idx, s_pad, n_pad)
    _, ohT_g, inv_g = build_segment_mats(graph_idx, g_pad, n_pad)
    oh_both = jnp.concatenate([oh_atom, oh_ele], axis=1).astype(cd)
    ohT_atom, ohT_ele, ohT_g = ohT_atom.astype(cd), ohT_ele.astype(cd), ohT_g.astype(cd)

    # fused, lane-dense embed input + block-diagonal weight
    d_in = 2 * n_af + n_rf + n_bf
    d_in_pad = _round_up(d_in, 128)
    w_ea, b_ea = params["embed_atom"]
    w_er, b_er = params["embed_rdf"]
    w_eb, b_eb = params["embed_bdf"]
    w_big = jnp.zeros((d_in_pad, 4 * N_EMBED), f32)
    w_big = w_big.at[:n_af, :N_EMBED].set(w_ea)
    w_big = w_big.at[n_af:2 * n_af, N_EMBED:2 * N_EMBED].set(w_ea)
    w_big = w_big.at[2 * n_af:2 * n_af + n_rf, 2 * N_EMBED:3 * N_EMBED].set(w_er)
    w_big = w_big.at[2 * n_af + n_rf:d_in, 3 * N_EMBED:].set(w_eb)
    b_big = jnp.concatenate([b_ea, b_ea, b_er, b_eb]).reshape(1, -1)
    feat = jnp.zeros((n_pad, d_in_pad), f32)
    feat = feat.at[:n, :2 * n_af].set(atom_feat)
    feat = feat.at[:n, 2 * n_af:2 * n_af + n_rf].set(rdf_feat)
    feat = feat.at[:n, 2 * n_af + n_rf:d_in].set(bdf_feat)

    dl1 = _prep_module(params["dl1"], cd)
    dl2 = _prep_module(params["dl2"], cd)

    # kernel 1: embed + pooled means for dl1 (as gather tables q_r1/q_b1)
    h, xd, q_r1, q_b1 = embed_pool(feat.astype(cd), w_big.astype(cd), b_big,
                                   ohT_atom, ohT_ele, inv_atom, inv_ele,
                                   dl1["wp_r"], dl1["wp_b"], tile_rows, cd)

    # kernel 2: ModuleDistLayers #1 + pooled means for dl2
    y1, q_r2, q_b2 = module_pool(h, xd, oh_both, q_r1, q_b1, dl1,
                                 ohT_atom, ohT_ele, inv_atom, inv_ele,
                                 dl2["wp_r"], dl2["wp_b"], tile_rows, cd)

    # head params (lane-padded)
    w1, b1 = params["fc1"]
    w2, b2 = params["fc2"]
    d1, d2 = w1.shape[1], w2.shape[1]
    d1p, d2p = _round_up(d1, 128), _round_up(d2, 128)
    w1h = jnp.zeros((2 * N_EMBED, d1p), f32).at[:, :d1].set(w1[:2 * N_EMBED])
    w1r = jnp.zeros((1, d1p), f32).at[0, :d1].set(w1[2 * N_EMBED])
    b1p = jnp.zeros((1, d1p), f32).at[0, :d1].set(b1)
    w2p = jnp.zeros((d1p, d2p), f32).at[:d1, :d2].set(w2)
    b2p = jnp.zeros((1, d2p), f32).at[0, :d2].set(b2)
    ref_pad = jnp.zeros((g_pad, 1), f32).at[:num_graphs].set(ref_feat)

    # kernel 3: ModuleDistLayers #2 + graph mean-pool + fc1/relu/fc2 head
    gap = module_head(y1, xd, oh_both, q_r2, q_b2, dl2,
                      ohT_g, inv_g, ref_pad,
                      w1h.astype(cd), w1r, b1p, w2p.astype(cd), b2p, tile_rows)
    return gap[:num_graphs, :d2]


# ----------------------------- params -----------------------------

def init_params(key, n_af, n_rf, n_bf):
    keys = iter(jax.random.split(key, 64))

    def lin(din, dout):
        w = jax.random.normal(next(keys), (din, dout), jnp.float32) / jnp.sqrt(float(din))
        b = 0.01 * jax.random.normal(next(keys), (dout,), jnp.float32)
        return w, b

    def bn(d):
        gamma = 1.0 + 0.05 * jax.random.normal(next(keys), (d,), jnp.float32)
        beta = 0.05 * jax.random.normal(next(keys), (d,), jnp.float32)
        mean = 0.05 * jax.random.normal(next(keys), (d,), jnp.float32)
        var = 1.0 + 0.1 * jnp.abs(jax.random.normal(next(keys), (d,), jnp.float32))
        return gamma, beta, mean, var

    def dist_layer(n_de, n_ae):
        return dict(fc1=lin(n_de + 2 * n_ae, 2 * n_ae), bn1=bn(2 * n_ae))

    def module_dl(n_ae, n_re, n_be):
        return dict(rdf=dist_layer(n_re, n_ae), bdf=dist_layer(n_be, n_ae),
                    fc1=lin(4 * n_ae, 2 * n_ae))

    return dict(
        embed_atom=lin(n_af, N_EMBED),
        embed_rdf=lin(n_rf, N_EMBED),
        embed_bdf=lin(n_bf, N_EMBED),
        dl1=module_dl(N_EMBED, N_EMBED, N_EMBED),
        dl2=module_dl(N_EMBED, N_EMBED, N_EMBED),
        fc1=lin(2 * N_EMBED + 1, 16),
        fc2=lin(16, 1),
    )


# ----------------------------- pure-JAX reference -----------------------------

def ref_forward(params, atom_feat, rdf_feat, bdf_feat, atom_idx, ele_idx,
                graph_idx, ref_feat, num_atoms, num_ele, num_graphs, n_af):
    def lin(x, wb):
        w, b = wb
        return x @ w + b

    def gmp(x, idx, s):
        sums = jax.ops.segment_sum(x, idx, num_segments=s)
        cnt = jax.ops.segment_sum(jnp.ones((x.shape[0],), jnp.float32), idx, num_segments=s)
        return sums / jnp.maximum(cnt, 1.0)[:, None]

    def dist_layer(p, x, dist_feat):
        n_ae = N_EMBED
        h = jnp.concatenate([
            dist_feat,
            jax.nn.relu(gmp(x[:, :n_ae], atom_idx, num_atoms))[atom_idx],
            jax.nn.relu(gmp(x[:, n_ae:], ele_idx, num_ele))[ele_idx]], axis=1)
        h = lin(h, p["fc1"])
        gamma, beta, mean, var = p["bn1"]
        h = (h - mean) / jnp.sqrt(var + 1e-5) * gamma + beta
        return jax.nn.relu(h + x)

    def module_dl(p, x, x_rdf, x_bdf):
        x1 = dist_layer(p["rdf"], x, x_rdf)
        x2 = dist_layer(p["bdf"], x, x_bdf)
        return jax.nn.relu(lin(jnp.concatenate([x1, x2], axis=1), p["fc1"]))

    atom_1 = jax.nn.relu(lin(atom_feat[:, :n_af], params["embed_atom"]))
    atom_2 = jax.nn.relu(lin(atom_feat[:, n_af:], params["embed_atom"]))
    x_rdf = jnp.clip(lin(rdf_feat, params["embed_rdf"]), 0.0, 6.0)
    x_bdf = jnp.clip(lin(bdf_feat, params["embed_bdf"]), 0.0, 6.0)
    h = jnp.concatenate([atom_1, atom_2], axis=1)
    h = module_dl(params["dl1"], h, x_rdf, x_bdf)
    h = module_dl(params["dl2"], h, x_rdf, x_bdf)
    g = gmp(h, graph_idx, num_graphs)
    hg = jnp.concatenate([g, ref_feat], axis=1)
    y = jax.nn.relu(lin(hg, params["fc1"]))
    return lin(y, params["fc2"])


# ----------------------------- main -----------------------------

if __name__ == "__main__":
    key = jax.random.PRNGKey(0)
    n_af, n_rf, n_bf = 8, 16, 24
    N, num_atoms, num_ele, G = 16, 4, 3, 2

    kp, k1, k2, k3, k4, k5, k6 = jax.random.split(key, 7)
    params = init_params(kp, n_af, n_rf, n_bf)

    atom_feat = jax.random.normal(k1, (N, 2 * n_af), jnp.float32)  # [:, :n_af] & [:, n_af:]
    rdf_feat = jax.random.normal(k2, (N, n_rf), jnp.float32)
    bdf_feat = jax.random.normal(k3, (N, n_bf), jnp.float32)
    atom_idx = jax.random.randint(k4, (N,), 0, num_atoms, dtype=jnp.int32)
    ele_idx = jax.random.randint(k5, (N,), 0, num_ele, dtype=jnp.int32)
    graph_idx = jnp.concatenate([jnp.zeros((N // 2,), jnp.int32),
                                 jnp.ones((N - N // 2,), jnp.int32)])
    ref_feat = jax.random.normal(k6, (G, 1), jnp.float32)

    ref = ref_forward(params, atom_feat, rdf_feat, bdf_feat, atom_idx, ele_idx,
                      graph_idx, ref_feat, num_atoms, num_ele, G, n_af)

    # exact-parity path (f32 MXU operands)
    gap_f32 = dist_nn_forward(params, atom_feat, rdf_feat, bdf_feat, atom_idx,
                              ele_idx, graph_idx, ref_feat, num_atoms, num_ele,
                              G, n_af, use_bf16=False)
    gap_f32 = jax.block_until_ready(gap_f32)
    np.testing.assert_allclose(np.asarray(gap_f32), np.asarray(ref),
                               rtol=1e-3, atol=1e-3)

    # production path (bf16 MXU operands, f32 accumulation) -- loose tolerance
    gap_bf16 = dist_nn_forward(params, atom_feat, rdf_feat, bdf_feat, atom_idx,
                               ele_idx, graph_idx, ref_feat, num_atoms, num_ele,
                               G, n_af, use_bf16=True)
    gap_bf16 = jax.block_until_ready(gap_bf16)
    np.testing.assert_allclose(np.asarray(gap_bf16), np.asarray(ref),
                               rtol=1e-1, atol=1e-1)

    assert gap_f32.shape == (G, 1) and gap_bf16.shape == (G, 1)
    print("KERNEL_OK")
</pallas_src>

<mosaic_0001>
module attributes {stable_mosaic.version = 11 : i64} {
  func.func @_embed_pool_kernel(%arg0: i32, %arg1: memref<16x128xf32, #tpu.memory_space<vmem>>, %arg2: memref<128x512xf32, #tpu.memory_space<vmem>>, %arg3: memref<1x512xf32, #tpu.memory_space<vmem>>, %arg4: memref<16x16xf32, #tpu.memory_space<vmem>>, %arg5: memref<16x16xf32, #tpu.memory_space<vmem>>, %arg6: memref<16x1xf32, #tpu.memory_space<vmem>>, %arg7: memref<16x1xf32, #tpu.memory_space<vmem>>, %arg8: memref<256x256xf32, #tpu.memory_space<vmem>>, %arg9: memref<256x256xf32, #tpu.memory_space<vmem>>, %arg10: memref<16x256xf32, #tpu.memory_space<vmem>>, %arg11: memref<16x256xf32, #tpu.memory_space<vmem>>, %arg12: memref<32x256xf32, #tpu.memory_space<vmem>>, %arg13: memref<32x256xf32, #tpu.memory_space<vmem>>, %arg14: memref<16x256xf32, #tpu.memory_space<vmem>>) attributes {dimension_semantics = [#tpu.dimension_semantics<arbitrary>], iteration_bounds = array<i64: 1>, scalar_prefetch = 0 : i64, scratch_operands = 1 : i64, tpu.core_type = #tpu.core_type<tc>, window_params = [{transform_indices = @transform_0, window_bounds = array<i64: 16, 128>}, {pipeline_mode = #tpu.pipeline_mode<synchronous>, transform_indices = @transform_1, window_bounds = array<i64: 128, 512>}, {pipeline_mode = #tpu.pipeline_mode<synchronous>, transform_indices = @transform_2, window_bounds = array<i64: 1, 512>}, {transform_indices = @transform_3, window_bounds = array<i64: 16, 16>}, {transform_indices = @transform_4, window_bounds = array<i64: 16, 16>}, {pipeline_mode = #tpu.pipeline_mode<synchronous>, transform_indices = @transform_5, window_bounds = array<i64: 16, 1>}, {pipeline_mode = #tpu.pipeline_mode<synchronous>, transform_indices = @transform_6, window_bounds = array<i64: 16, 1>}, {pipeline_mode = #tpu.pipeline_mode<synchronous>, transform_indices = @transform_7, window_bounds = array<i64: 256, 256>}, {pipeline_mode = #tpu.pipeline_mode<synchronous>, transform_indices = @transform_8, window_bounds = array<i64: 256, 256>}, {transform_indices = @transform_9, window_bounds = array<i64: 16, 256>}, {transform_indices = @transform_10, window_bounds = array<i64: 16, 256>}, {pipeline_mode = #tpu.pipeline_mode<synchronous>, transform_indices = @transform_11, window_bounds = array<i64: 32, 256>}, {pipeline_mode = #tpu.pipeline_mode<synchronous>, transform_indices = @transform_12, window_bounds = array<i64: 32, 256>}]} {
    %c0_i32 = arith.constant 0 : i32
    %0 = arith.cmpi eq, %arg0, %c0_i32 : i32
    %1 = arith.extui %0 : i1 to i32
    %c0_i32_0 = arith.constant 0 : i32
    %2 = arith.cmpi ne, %1, %c0_i32_0 : i32
    scf.if %2 {
      %cst_28 = arith.constant 0.000000e+00 : f32
      %34 = vector.broadcast %cst_28 : f32 to vector<16x256xf32>
      %c0_29 = arith.constant 0 : index
      %c0_30 = arith.constant 0 : index
      %35 = vector.load %arg14[%c0_29, %c0_30] : memref<16x256xf32, #tpu.memory_space<vmem>>, vector<16x256xf32>
      tpu.vector_store %arg14[%c0_29, %c0_30], %34 {strides = array<i32>} : memref<16x256xf32, #tpu.memory_space<vmem>>, vector<16x256xf32>,
    } else {
    }
    %c0 = arith.constant 0 : index
    %c0_1 = arith.constant 0 : index
    %3 = vector.load %arg1[%c0, %c0_1] : memref<16x128xf32, #tpu.memory_space<vmem>>, vector<16x128xf32>
    %c0_2 = arith.constant 0 : index
    %c0_3 = arith.constant 0 : index
    %4 = vector.load %arg2[%c0_2, %c0_3] : memref<128x512xf32, #tpu.memory_space<vmem>>, vector<128x512xf32>
    %cst = arith.constant dense<0.000000e+00> : vector<16x512xf32>
    %5 = tpu.matmul %3, %4, %cst {dimension_numbers = #tpu.dot_dimension_numbers<[1], [0], [0], [1], [0, 0, 1, 1], [], []>} : vector<16x128xf32>, vector<128x512xf32>, vector<16x512xf32> -> vector<16x512xf32>
    %c0_4 = arith.constant 0 : index
    %c0_5 = arith.constant 0 : index
    %6 = vector.load %arg3[%c0_4, %c0_5] : memref<1x512xf32, #tpu.memory_space<vmem>>, vector<1x512xf32>
    %7 = vector.broadcast %6 : vector<1x512xf32> to vector<16x512xf32>
    %8 = arith.addf %5, %7 : vector<16x512xf32>
    %9 = vector.extract_strided_slice %8 {offsets = [0, 0], sizes = [16, 256], strides = [1, 1]} : vector<16x512xf32> to vector<16x256xf32>
    %cst_6 = arith.constant 0.000000e+00 : f32
    %10 = vector.broadcast %cst_6 : f32 to vector<16x256xf32>
    %11 = arith.maximumf %9, %10 : vector<16x256xf32>
    %12 = vector.extract_strided_slice %8 {offsets = [0, 256], sizes = [16, 256], strides = [1, 1]} : vector<16x512xf32> to vector<16x256xf32>
    %cst_7 = arith.constant 0.000000e+00 : f32
    %cst_8 = arith.constant 6.000000e+00 : f32
    %13 = vector.broadcast %cst_7 : f32 to vector<16x256xf32>
    %14 = arith.maximumf %13, %12 : vector<16x256xf32>
    %15 = vector.broadcast %cst_8 : f32 to vector<16x256xf32>
    %16 = arith.minimumf %15, %14 : vector<16x256xf32>
    %c0_9 = arith.constant 0 : index
    %c0_10 = arith.constant 0 : index
    %17 = vector.load %arg10[%c0_9, %c0_10] : memref<16x256xf32, #tpu.memory_space<vmem>>, vector<16x256xf32>
    tpu.vector_store %arg10[%c0_9, %c0_10], %11 {strides = array<i32>} : memref<16x256xf32, #tpu.memory_space<vmem>>, vector<16x256xf32>,
    %c0_11 = arith.constant 0 : index
    %c0_12 = arith.constant 0 : index
    %18 = vector.load %arg11[%c0_11, %c0_12] : memref<16x256xf32, #tpu.memory_space<vmem>>, vector<16x256xf32>
    tpu.vector_store %arg11[%c0_11, %c0_12], %16 {strides = array<i32>} : memref<16x256xf32, #tpu.memory_space<vmem>>, vector<16x256xf32>,
    %c0_13 = arith.constant 0 : index
    %c0_14 = arith.constant 0 : index
    %19 = vector.load %arg14[%c0_13, %c0_14] : memref<16x256xf32, #tpu.memory_space<vmem>>, vector<16x128xf32>
    %c0_15 = arith.constant 0 : index
    %c0_16 = arith.constant 0 : index
    %20 = vector.load %arg4[%c0_15, %c0_16] : memref<16x16xf32, #tpu.memory_space<vmem>>, vector<16x16xf32>
    %21 = vector.extract_strided_slice %11 {offsets = [0, 0], sizes = [16, 128], strides = [1, 1]} : vector<16x256xf32> to vector<16x128xf32>
    %cst_17 = arith.constant dense<0.000000e+00> : vector<16x128xf32>
    %22 = tpu.matmul %20, %21, %cst_17 {dimension_numbers = #tpu.dot_dimension_numbers<[1], [0], [0], [1], [0, 0, 1, 1], [], []>} : vector<16x16xf32>, vector<16x128xf32>, vector<16x128xf32> -> vector<16x128xf32>
    %23 = arith.addf %19, %22 : vector<16x128xf32>
    %c0_18 = arith.constant 0 : index
    %c0_19 = arith.constant 0 : index
    %24 = vector.load %arg14[%c0_18, %c0_19] : memref<16x256xf32, #tpu.memory_space<vmem>>, vector<16x128xf32>
    tpu.vector_store %arg14[%c0_18, %c0_19], %23 {strides = array<i32>} : memref<16x256xf32, #tpu.memory_space<vmem>>, vector<16x128xf32>,
    %c0_20 = arith.constant 0 : index
    %c128 = arith.constant 128 : index
    %25 = vector.load %arg14[%c0_20, %c128] : memref<16x256xf32, #tpu.memory_space<vmem>>, vector<16x128xf32>
    %c0_21 = arith.constant 0 : index
    %c0_22 = arith.constant 0 : index
    %26 = vector.load %arg5[%c0_21, %c0_22] : memref<16x16xf32, #tpu.memory_space<vmem>>, vector<16x16xf32>
    %27 = vector.extract_strided_slice %11 {offsets = [0, 128], sizes = [16, 128], strides = [1, 1]} : vector<16x256xf32> to vector<16x128xf32>
    %cst_23 = arith.constant dense<0.000000e+00> : vector<16x128xf32>
    %28 = tpu.matmul %26, %27, %cst_23 {dimension_numbers = #tpu.dot_dimension_numbers<[1], [0], [0], [1], [0, 0, 1, 1], [], []>} : vector<16x16xf32>, vector<16x128xf32>, vector<16x128xf32> -> vector<16x128xf32>
    %29 = arith.addf %25, %28 : vector<16x128xf32>
    %c0_24 = arith.constant 0 : index
    %c128_25 = arith.constant 128 : index
    %30 = vector.load %arg14[%c0_24, %c128_25] : memref<16x256xf32, #tpu.memory_space<vmem>>, vector<16x128xf32>
    tpu.vector_store %arg14[%c0_24, %c128_25], %29 {strides = array<i32>} : memref<16x256xf32, #tpu.memory_space<vmem>>, vector<16x128xf32>,
    %c0_i32_26 = arith.constant 0 : i32
    %31 = arith.cmpi eq, %arg0, %c0_i32_26 : i32
    %32 = arith.extui %31 : i1 to i32
    %c0_i32_27 = arith.constant 0 : i32
    %33 = arith.cmpi ne, %32, %c0_i32_27 : i32
    scf.if %33 {
      %c0_28 = arith.constant 0 : index
      %c0_29 = arith.constant 0 : index
      %34 = vector.load %arg14[%c0_28, %c0_29] : memref<16x256xf32, #tpu.memory_space<vmem>>, vector<16x256xf32>
      %c0_30 = arith.constant 0 : index
      %c0_31 = arith.constant 0 : index
      %35 = vector.load %arg6[%c0_30, %c0_31] : memref<16x1xf32, #tpu.memory_space<vmem>>, vector<16x1xf32>
      %c0_32 = arith.constant 0 : index
      %c0_33 = arith.constant 0 : index
      %36 = vector.load %arg7[%c0_32, %c0_33] : memref<16x1xf32, #tpu.memory_space<vmem>>, vector<16x1xf32>
      %c0_34 = arith.constant 0 : index
      %c0_35 = arith.constant 0 : index
      %37 = vector.load %arg8[%c0_34, %c0_35] : memref<256x256xf32, #tpu.memory_space<vmem>>, vector<256x256xf32>
      %c0_36 = arith.constant 0 : index
      %c0_37 = arith.constant 0 : index
      %38 = vector.load %arg9[%c0_36, %c0_37] : memref<256x256xf32, #tpu.memory_space<vmem>>, vector<256x256xf32>
      %39 = vector.extract_strided_slice %34 {offsets = [0, 0], sizes = [16, 128], strides = [1, 1]} : vector<16x256xf32> to vector<16x128xf32>
      %40 = vector.broadcast %35 : vector<16x1xf32> to vector<16x128xf32>
      %41 = arith.mulf %39, %40 : vector<16x128xf32>
      %cst_38 = arith.constant 0.000000e+00 : f32
      %42 = vector.broadcast %cst_38 : f32 to vector<16x128xf32>
      %43 = arith.maximumf %41, %42 : vector<16x128xf32>
      %44 = vector.extract_strided_slice %34 {offsets = [0, 128], sizes = [16, 128], strides = [1, 1]} : vector<16x256xf32> to vector<16x128xf32>
      %45 = vector.broadcast %36 : vector<16x1xf32> to vector<16x128xf32>
      %46 = arith.mulf %44, %45 : vector<16x128xf32>
      %cst_39 = arith.constant 0.000000e+00 : f32
      %47 = vector.broadcast %cst_39 : f32 to vector<16x128xf32>
      %48 = arith.maximumf %46, %47 : vector<16x128xf32>
      %49 = vector.extract_strided_slice %37 {offsets = [0, 0], sizes = [128, 256], strides = [1, 1]} : vector<256x256xf32> to vector<128x256xf32>
      %cst_40 = arith.constant dense<0.000000e+00> : vector<16x256xf32>
      %50 = tpu.matmul %43, %49, %cst_40 {dimension_numbers = #tpu.dot_dimension_numbers<[1], [0], [0], [1], [0, 0, 1, 1], [], []>} : vector<16x128xf32>, vector<128x256xf32>, vector<16x256xf32> -> vector<16x256xf32>
      %c0_41 = arith.constant 0 : index
      %c0_42 = arith.constant 0 : index
      %51 = vector.load %arg12[%c0_41, %c0_42] : memref<32x256xf32, #tpu.memory_space<vmem>>, vector<16x256xf32>
      tpu.vector_store %arg12[%c0_41, %c0_42], %50 {strides = array<i32>} : memref<32x256xf32, #tpu.memory_space<vmem>>, vector<16x256xf32>,
      %52 = vector.extract_strided_slice %37 {offsets = [128, 0], sizes = [128, 256], strides = [1, 1]} : vector<256x256xf32> to vector<128x256xf32>
      %cst_43 = arith.constant dense<0.000000e+00> : vector<16x256xf32>
      %53 = tpu.matmul %48, %52, %cst_43 {dimension_numbers = #tpu.dot_dimension_numbers<[1], [0], [0], [1], [0, 0, 1, 1], [], []>} : vector<16x128xf32>, vector<128x256xf32>, vector<16x256xf32> -> vector<16x256xf32>
      %c16 = arith.constant 16 : index
      %c0_44 = arith.constant 0 : index
      %54 = vector.load %arg12[%c16, %c0_44] : memref<32x256xf32, #tpu.memory_space<vmem>>, vector<16x256xf32>
      tpu.vector_store %arg12[%c16, %c0_44], %53 {strides = array<i32>} : memref<32x256xf32, #tpu.memory_space<vmem>>, vector<16x256xf32>,
      %55 = vector.extract_strided_slice %38 {offsets = [0, 0], sizes = [128, 256], strides = [1, 1]} : vector<256x256xf32> to vector<128x256xf32>
      %cst_45 = arith.constant dense<0.000000e+00> : vector<16x256xf32>
      %56 = tpu.matmul %43, %55, %cst_45 {dimension_numbers = #tpu.dot_dimension_numbers<[1], [0], [0], [1], [0, 0, 1, 1], [], []>} : vector<16x128xf32>, vector<128x256xf32>, vector<16x256xf32> -> vector<16x256xf32>
      %c0_46 = arith.constant 0 : index
      %c0_47 = arith.constant 0 : index
      %57 = vector.load %arg13[%c0_46, %c0_47] : memref<32x256xf32, #tpu.memory_space<vmem>>, vector<16x256xf32>
      tpu.vector_store %arg13[%c0_46, %c0_47], %56 {strides = array<i32>} : memref<32x256xf32, #tpu.memory_space<vmem>>, vector<16x256xf32>,
      %58 = vector.extract_strided_slice %38 {offsets = [128, 0], sizes = [128, 256], strides = [1, 1]} : vector<256x256xf32> to vector<128x256xf32>
      %cst_48 = arith.constant dense<0.000000e+00> : vector<16x256xf32>
      %59 = tpu.matmul %48, %58, %cst_48 {dimension_numbers = #tpu.dot_dimension_numbers<[1], [0], [0], [1], [0, 0, 1, 1], [], []>} : vector<16x128xf32>, vector<128x256xf32>, vector<16x256xf32> -> vector<16x256xf32>
      %c16_49 = arith.constant 16 : index
      %c0_50 = arith.constant 0 : index
      %60 = vector.load %arg13[%c16_49, %c0_50] : memref<32x256xf32, #tpu.memory_space<vmem>>, vector<16x256xf32>
      tpu.vector_store %arg13[%c16_49, %c0_50], %59 {strides = array<i32>} : memref<32x256xf32, #tpu.memory_space<vmem>>, vector<16x256xf32>,
    } else {
    }
    return
  }
  func.func @transform_0(%arg0: i32) -> (i32, i32) {
    %c0_i32 = arith.constant 0 : i32
    %c0_i32_0 = arith.constant 0 : i32
    return %arg0, %c0_i32 : i32, i32
  }
  func.func @transform_1(%arg0: i32) -> (i32, i32) {
    %c0_i32 = arith.constant 0 : i32
    %c0_i32_0 = arith.constant 0 : i32
    %c0_i32_1 = arith.constant 0 : i32
    return %c0_i32, %c0_i32_0 : i32, i32
  }
  func.func @transform_2(%arg0: i32) -> (i32, i32) {
    %c0_i32 = arith.constant 0 : i32
    %c0_i32_0 = arith.constant 0 : i32
    %c0_i32_1 = arith.constant 0 : i32
    return %c0_i32, %c0_i32_0 : i32, i32
  }
  func.func @transform_3(%arg0: i32) -> (i32, i32) {
    %c0_i32 = arith.constant 0 : i32
    %c0_i32_0 = arith.constant 0 : i32
    return %c0_i32, %arg0 : i32, i32
  }
  func.func @transform_4(%arg0: i32) -> (i32, i32) {
    %c0_i32 = arith.constant 0 : i32
    %c0_i32_0 = arith.constant 0 : i32
    return %c0_i32, %arg0 : i32, i32
  }
  func.func @transform_5(%arg0: i32) -> (i32, i32) {
    %c0_i32 = arith.constant 0 : i32
    %c0_i32_0 = arith.constant 0 : i32
    %c0_i32_1 = arith.constant 0 : i32
    return %c0_i32, %c0_i32_0 : i32, i32
  }
  func.func @transform_6(%arg0: i32) -> (i32, i32) {
    %c0_i32 = arith.constant 0 : i32
    %c0_i32_0 = arith.constant 0 : i32
    %c0_i32_1 = arith.constant 0 : i32
    return %c0_i32, %c0_i32_0 : i32, i32
  }
  func.func @transform_7(%arg0: i32) -> (i32, i32) {
    %c0_i32 = arith.constant 0 : i32
    %c0_i32_0 = arith.constant 0 : i32
    %c0_i32_1 = arith.constant 0 : i32
    return %c0_i32, %c0_i32_0 : i32, i32
  }
  func.func @transform_8(%arg0: i32) -> (i32, i32) {
    %c0_i32 = arith.constant 0 : i32
    %c0_i32_0 = arith.constant 0 : i32
    %c0_i32_1 = arith.constant 0 : i32
    return %c0_i32, %c0_i32_0 : i32, i32
  }
  func.func @transform_9(%arg0: i32) -> (i32, i32) {
    %c0_i32 = arith.constant 0 : i32
    %c0_i32_0 = arith.constant 0 : i32
    return %arg0, %c0_i32 : i32, i32
  }
  func.func @transform_10(%arg0: i32) -> (i32, i32) {
    %c0_i32 = arith.constant 0 : i32
    %c0_i32_0 = arith.constant 0 : i32
    return %arg0, %c0_i32 : i32, i32
  }
  func.func @transform_11(%arg0: i32) -> (i32, i32) {
    %c0_i32 = arith.constant 0 : i32
    %c0_i32_0 = arith.constant 0 : i32
    %c0_i32_1 = arith.constant 0 : i32
    return %c0_i32, %c0_i32_0 : i32, i32
  }
  func.func @transform_12(%arg0: i32) -> (i32, i32) {
    %c0_i32 = arith.constant 0 : i32
    %c0_i32_0 = arith.constant 0 : i32
    %c0_i32_1 = arith.constant 0 : i32
    return %c0_i32, %c0_i32_0 : i32, i32
  }
}

</mosaic_0001>

<bundles_post_ra>
// kernel: tpu_custom_call.1
= control target key start
LH: loop header
LB: loop body
LE: loop exit
PB: predicated region body
PF: predicated region fallthrough
CT: control target
= control target key end

     0   :  { %18 = vsyncpa [#allocation4], 0  ;;  %s1814_s0 = inlined_call_operand.vmem [shape: f32[16,128], index: 0, kind: input, shape index: {}]   ;;  %s1815_s1 = inlined_call_operand.hbm [shape: f32[128,512], index: 1, kind: input, shape index: {}]   ;;  %s1816_s2 = inlined_call_operand.hbm [shape: f32[1,512], index: 2, kind: input, shape index: {}]   ;;  %s1817_s3 = inlined_call_operand.vmem [shape: f32[16,16], index: 3, kind: input, shape index: {}]   ;;  %s1818_s4 = inlined_call_operand.vmem [shape: f32[16,16], index: 4, kind: input, shape index: {}]   ;;  %s1819_s5 = inlined_call_operand.vmem [shape: f32[16,1], index: 5, kind: input, shape index: {}]   ;;  %s1820_s6 = inlined_call_operand.vmem [shape: f32[16,1], index: 6, kind: input, shape index: {}]   ;;  %s1821_s7 = inlined_call_operand.hbm [shape: f32[256,256], index: 7, kind: input, shape index: {}]   ;;  %s1822_s8 = inlined_call_operand.hbm [shape: f32[256,256], index: 8, kind: input, shape index: {}]   ;;  %s1823_s9 = inlined_call_operand.hbm [shape: f32[16,256], index: 9, kind: output, shape index: {0}]   ;;  %s1824_s10 = inlined_call_operand.hbm [shape: f32[16,256], index: 10, kind: output, shape index: {1}]   ;;  %s1825_s11 = inlined_call_operand.hbm [shape: f32[32,256], index: 11, kind: output, shape index: {2}]   ;;  %s1826_s12 = inlined_call_operand.hbm [shape: f32[32,256], index: 12, kind: output, shape index: {3}]  }
   0x1   :  { %19 = vsyncpa [#allocation7], 0 }
   0x2   :  { %20 = vsyncpa [#allocation10], 0 }
   0x3   :  { %21 = vsyncpa [#allocation5], 0 }
   0x4   :  { %22 = vsyncpa [#allocation13], 0 }
   0x5   :  { %23 = vsyncpa [#allocation16], 0  ;;  %s1528_s21 = smov [#allocation6]   ;;  %s1529_s23 = smov [#allocation3]  }
   0x6   :  { %s44_s22 = sshll.u32 %s1528_s21, 4  ;;  %s31_s24 = sshll.u32 %s1529_s23, 4  ;;  %s45_s22 = int_to_ptr.vmem [resolvable:$true] %s44_s22  ;;  %s1607_s24 = int_to_ptr.vmem [resolvable:$true] %s31_s24 }
   0x7   :  { %s1340_s27 = scalar_lea.hbm %s1816_s2, 64 }
   0x8   :  { %p1341_p0 = scmp.ne.s32.totalorder %s1816_s2, %s1340_s27  ;;  %p1344_p1 = scmp.lt.u32.totalorder %s1340_s27, %s1816_s2 }
   0xa   :  { %p1346_p2 = pnand %p1344_p1, %p1341_p0 }
   0xc   :  { %1349 = shalt.err (!%p1346_p2)
}
   0xd   :  { %s1350_s14 = scalar_lea.vmem %s45_s22, 64  ;;  %p1355_p4 = scmp.lt.s32.totalorder %s45_s22, %s45_s22 }
   0xe   :  { %p1351_p3 = scmp.ne.s32.totalorder %s45_s22, %s1350_s14  ;;  %p1356_p5 = scmp.lt.s32.totalorder %s1350_s14, %s1350_s14 }
  0x10   :  { %p1357_p6 = por %p1356_p5, %p1355_p4 }
  0x12   :  { %p1358_p7 = pnand %p1357_p6, %p1351_p3 }
  0x14   :  { %1361 = shalt.err (!%p1358_p7)
}
  0x15   :  { %47 = dma.hbm_to_vmem [thread:$0]  %s1816_s2, 64, %s45_s22, [#allocation7]  }
  0x16   :  { %s1362_s19 = scalar_lea.hbm %s1815_s1, 8192 }
  0x17   :  { %p1363_p8 = scmp.ne.s32.totalorder %s1815_s1, %s1362_s19  ;;  %p1366_p9 = scmp.lt.u32.totalorder %s1362_s19, %s1815_s1 }
  0x19   :  { %p1368_p10 = pnand %p1366_p9, %p1363_p8 }
  0x1b   :  { %1371 = shalt.err (!%p1368_p10)
}
  0x1c   :  { %s1372_s26 = scalar_lea.vmem %s1607_s24, 8192  ;;  %p1377_p12 = scmp.lt.s32.totalorder %s1607_s24, %s1607_s24 }
  0x1d   :  { %p1373_p11 = scmp.ne.s32.totalorder %s1607_s24, %s1372_s26  ;;  %p1378_p13 = scmp.lt.s32.totalorder %s1372_s26, %s1372_s26 }
  0x1f   :  { %p1379_p0 = por %p1378_p13, %p1377_p12 }
  0x21   :  { %p1380_p1 = pnand %p1379_p0, %p1373_p11 }
  0x23   :  { %1383 = shalt.err (!%p1380_p1)
}
  0x24   :  { %s1530_s2 = smov 512   ;;  %s1531_s22 = smov 32  }
  0x25   :  { %37 = dma.hbm_to_vmem [thread:$0]  %s1815_s1, 8192, %s1607_s24, [#allocation4], %s1530_s2, %s1530_s2, %s1531_s22  }
  0x26   :  { %s1532_s29 = smov [#allocation8]   ;;  %s1384_s15 = scalar_lea.hbm %s1821_s7, 8192 }
  0x27   :  { %s61_s30 = sshll.u32 %s1532_s29, 4  ;;  %p1385_p2 = scmp.ne.s32.totalorder %s1821_s7, %s1384_s15  ;;  %s62_s30 = int_to_ptr.vmem [resolvable:$true] %s61_s30 }
  0x28   :  { %p1388_p3 = scmp.lt.u32.totalorder %s1384_s15, %s1821_s7 }
  0x2a   :  { %p1390_p4 = pnand %p1388_p3, %p1385_p2 }
  0x2c   :  { %1393 = shalt.err (!%p1390_p4)
}
  0x2d   :  { %s1394_s20 = scalar_lea.vmem %s62_s30, 8192  ;;  %p1399_p6 = scmp.lt.s32.totalorder %s62_s30, %s62_s30 }
  0x2e   :  { %p1395_p5 = scmp.ne.s32.totalorder %s62_s30, %s1394_s20  ;;  %p1400_p7 = scmp.lt.s32.totalorder %s1394_s20, %s1394_s20 }
  0x30   :  { %p1401_p8 = por %p1400_p7, %p1399_p6 }
  0x32   :  { %p1402_p9 = pnand %p1401_p8, %p1395_p5 }
  0x34   :  { %1405 = shalt.err (!%p1402_p9)
}
  0x35   :  { %s1533_s1 = smov 256   ;;  %s1534_s24 = smov 16  }
  0x36   :  { %67 = dma.hbm_to_vmem [thread:$0]  %s1821_s7, 8192, %s62_s30, [#allocation7], %s1533_s1, %s1533_s1, %s1534_s24  }
  0x37   :  { %s1535_s25 = smov [#allocation9]   ;;  %s1406_s27 = scalar_lea.hbm %s1822_s8, 8192 }
  0x38   :  { %s73_s26 = sshll.u32 %s1535_s25, 4  ;;  %p1407_p10 = scmp.ne.s32.totalorder %s1822_s8, %s1406_s27  ;;  %s74_s26 = int_to_ptr.vmem [resolvable:$true] %s73_s26 }
  0x39   :  { %p1410_p11 = scmp.lt.u32.totalorder %s1406_s27, %s1822_s8 }
  0x3b   :  { %p1412_p12 = pnand %p1410_p11, %p1407_p10 }
  0x3d   :  { %1415 = shalt.err (!%p1412_p12)
}
  0x3e   :  { %s1416_s15 = scalar_lea.vmem %s74_s26, 8192  ;;  %p1421_p0 = scmp.lt.s32.totalorder %s74_s26, %s74_s26 }
  0x3f   :  { %p1417_p13 = scmp.ne.s32.totalorder %s74_s26, %s1416_s15  ;;  %p1422_p1 = scmp.lt.s32.totalorder %s1416_s15, %s1416_s15 }
  0x41   :  { %p1423_p2 = por %p1422_p1, %p1421_p0 }
  0x43   :  { %p1424_p3 = pnand %p1423_p2, %p1417_p13 }
  0x45   :  { %1427 = shalt.err (!%p1424_p3)
}
  0x46   :  { %79 = dma.hbm_to_vmem [thread:$0]  %s1822_s8, 8192, %s74_s26, [#allocation10], %s1533_s1, %s1533_s1, %s1534_s24  }
  0x47   :  { %1516 = dma.done.wait [#allocation4], 8192  }
  0x48   :  { %1517 = vsyncadd [#allocation4], 4294959104 }
  0x49   :  { %1518 = dma.done.wait [#allocation7], 8256  }
  0x4a   :  { %1519 = vsyncadd [#allocation7], 4294959040 }
  0x4b   :  { %1520 = dma.done.wait [#allocation10], 8192  }
  0x4c   :  { %1521 = vsyncadd [#allocation10], 4294959104  ;;  %v1536_v0 = vmov 0.0   ;;  %v103_v1 = vld [vmem:[#allocation3 + $0x8] sm:$0xff]  ;;  %v102_v3 = vld [vmem:[#allocation3] sm:$0xff]  ;;  %vm366_vm0 = vcmask 130048  }
  0x4d   :  { %252 = vmatprep.mubr.f32.mxu0 %v1536_v0  ;;  %329 = vmatprep.mubr.f32.mxu1 %v1536_v0  ;;  %v107_v2 = vld [vmem:[#allocation3 + $0x28] sm:$0xff]  ;;  %v106_v5 = vld [vmem:[#allocation3 + $0x20] sm:$0xff]  ;;  %v105_v28 = vld [vmem:[#allocation3 + $0x18] sm:$0xff]  ;;  %s1539_s15 = smov [#allocation11]  }
  0x4e   :  { %v1124_v4 = vpack.c.bf16 %v107_v2, %v103_v1  ;;  %v111_v6 = vld [vmem:[#allocation3 + $0x48] sm:$0xff]  ;;  %v1126_v8 = vpack.c.bf16 %v106_v5, %v102_v3  ;;  %v110_v10 = vld [vmem:[#allocation3 + $0x40] sm:$0xff]  ;;  %v109_v29 = vld [vmem:[#allocation3 + $0x38] sm:$0xff]  ;;  %s1037_s7 = sshll.u32 %s1539_s15, 4  ;;  %s1038_s7 = int_to_ptr.vmem [resolvable:$true] %s1037_s7 }
  0x4f   :  { %v115_v7 = vld [vmem:[#allocation3 + $0x68] sm:$0xff]  ;;  %v114_v11 = vld [vmem:[#allocation3 + $0x60] sm:$0xff]  ;;  %v1156_v32 = vpack.c.bf16 %v109_v29, %v105_v28  ;;  %v104_v33 = vld [vmem:[#allocation3 + $0x10] sm:$0xff] }
  0x50   :  { %v1128_v9 = vpack.c.bf16 %v115_v7, %v111_v6  ;;  %v119_v12 = vld [vmem:[#allocation3 + $0x88] sm:$0xff]  ;;  %1125 = vmatprep.subr.bf16.mxu0 %v1124_v4  ;;  %v1130_v14 = vpack.c.bf16 %v114_v11, %v110_v10  ;;  %v118_v16 = vld [vmem:[#allocation3 + $0x80] sm:$0xff]  ;;  %v108_v34 = vld [vmem:[#allocation3 + $0x30] sm:$0xff] }
  0x51   :  { %v123_v13 = vld [vmem:[#allocation3 + $0xa8] sm:$0xff]  ;;  %1127 = vmatpush1.bf16.msra.mxu0 %v1126_v8  ;;  %v122_v17 = vld [vmem:[#allocation3 + $0xa0] sm:$0xff]  ;;  %v113_v35 = vld [vmem:[#allocation3 + $0x58] sm:$0xff]  ;;  %v1158_v37 = vpack.c.bf16 %v108_v34, %v104_v33  ;;  %1157 = vmatprep.subr.bf16.mxu1 %v1156_v32 }
  0x52   :  { %1129 = vmatprep.subr.bf16.mxu0 %v1128_v9  ;;  %v1132_v15 = vpack.c.bf16 %v123_v13, %v119_v12  ;;  %v127_v18 = vld [vmem:[#allocation3 + $0xc8] sm:$0xff]  ;;  %v1134_v20 = vpack.c.bf16 %v122_v17, %v118_v16  ;;  %v126_v22 = vld [vmem:[#allocation3 + $0xc0] sm:$0xff]  ;;  %v117_v38 = vld [vmem:[#allocation3 + $0x78] sm:$0xff] }
  0x53   :  { %v131_v19 = vld [vmem:[#allocation3 + $0xe8] sm:$0xff]  ;;  %v130_v23 = vld [vmem:[#allocation3 + $0xe0] sm:$0xff]  ;;  %v112_v39 = vld [vmem:[#allocation3 + $0x50] sm:$0xff]  ;;  %v1160_v42 = vpack.c.bf16 %v117_v38, %v113_v35  ;;  %1159 = vmatpush1.bf16.msra.mxu1 %v1158_v37 }
  0x54   :  { %v1136_v21 = vpack.c.bf16 %v131_v19, %v127_v18  ;;  %v135_v24 = vld [vmem:[#allocation3 + $0x108] sm:$0xff]  ;;  %v134_v26 = vld [vmem:[#allocation3 + $0x100] sm:$0xff]  ;;  %v1138_v30 = vpack.c.bf16 %v130_v23, %v126_v22  ;;  %v116_v40 = vld [vmem:[#allocation3 + $0x70] sm:$0xff] }
  0x55   :  { %1131 = vmatpush1.bf16.msra.mxu0 %v1130_v14  ;;  %v139_v25 = vld [vmem:[#allocation3 + $0x128] sm:$0xff]  ;;  %v138_v27 = vld [vmem:[#allocation3 + $0x120] sm:$0xff]  ;;  %v121_v43 = vld [vmem:[#allocation3 + $0x98] sm:$0xff]  ;;  %v1162_v45 = vpack.c.bf16 %v116_v40, %v112_v39  ;;  %1161 = vmatprep.subr.bf16.mxu1 %v1160_v42  ;;  %v1537_v40 = vmov 0  }
  0x56   :  { %1133 = vmatprep.subr.bf16.mxu0 %v1132_v15  ;;  %v143_v31 = vld [vmem:[#allocation3 + $0x148] sm:$0xff]  ;;  %v1140_v36 = vpack.c.bf16 %v139_v25, %v135_v24  ;;  %v125_v44 = vld [vmem:[#allocation3 + $0xb8] sm:$0xff]  ;;  %v1142_v46 = vpack.c.bf16 %v138_v27, %v134_v26  ;;  %v142_v47 = vld [vmem:[#allocation3 + $0x140] sm:$0xff]  ;;  %1338 = vset.pattern.permute.xlu0 %v1537_v40 }
  0x57   :  { %v147_v41 = vld [vmem:[#allocation3 + $0x168] sm:$0xff]  ;;  %v1164_v48 = vpack.c.bf16 %v125_v44, %v121_v43  ;;  %v120_v49 = vld [vmem:[#allocation3 + $0x90] sm:$0xff]  ;;  %v146_v52 = vld [vmem:[#allocation3 + $0x160] sm:$0xff]  ;;  %1163 = vmatpush1.bf16.msra.mxu1 %v1162_v45  ;;  %1339 = vset.pattern.permute.xlu1 %v1537_v40  ;;  %v168_v43 = vlaneseq }
  0x58   :  { %v124_v50 = vld [vmem:[#allocation3 + $0xb0] sm:$0xff]  ;;  %v1144_v51 = vpack.c.bf16 %v147_v41, %v143_v31  ;;  %v129_v53 = vld [vmem:[#allocation3 + $0xd8] sm:$0xff]  ;;  %v151_v55 = vld [vmem:[#allocation3 + $0x188] sm:$0xff]  ;;  %v1146_v58 = vpack.c.bf16 %v146_v52, %v142_v47 }
  0x59   :  { %1135 = vmatpush1.bf16.msra.mxu0 %v1134_v20  ;;  %v133_v54 = vld [vmem:[#allocation3 + $0xf8] sm:$0xff]  ;;  %v155_v56 = vld [vmem:[#allocation3 + $0x1a8] sm:$0xff]  ;;  %v1166_v57 = vpack.c.bf16 %v124_v50, %v120_v49  ;;  %v150_v59 = vld [vmem:[#allocation3 + $0x180] sm:$0xff]  ;;  %1165 = vmatprep.subr.bf16.mxu1 %v1164_v48  ;;  %v1698_v44 = vshrl.u32 %v168_v43, 7 }
  0x5a   :  { %1137 = vmatprep.subr.bf16.mxu0 %v1136_v21  ;;  %v1168_v60 = vpack.c.bf16 %v133_v54, %v129_v53  ;;  %v128_v61 = vld [vmem:[#allocation3 + $0xd0] sm:$0xff]  ;;  %v1148_v63 = vpack.c.bf16 %v155_v56, %v151_v55  ;;  %v154_v1 = vld [vmem:[#allocation3 + $0x1a0] sm:$0xff]  ;;  %v137_v2 = vld [vmem:[#allocation3 + $0x118] sm:$0xff] }
  0x5b   :  { %v132_v62 = vld [vmem:[#allocation3 + $0xf0] sm:$0xff]  ;;  %v141_v3 = vld [vmem:[#allocation3 + $0x138] sm:$0xff]  ;;  %v159_v4 = vld [vmem:[#allocation3 + $0x1c8] sm:$0xff]  ;;  %1167 = vmatpush1.bf16.msra.mxu1 %v1166_v57  ;;  %v1150_v7 = vpack.c.bf16 %v154_v1, %v150_v59  ;;  %v170_v45 = vsub.s32 0, %v1698_v44  ;;  %v174_v47 = vsub.s32 1, %v1698_v44 }
  0x5c   :  { %v163_v5 = vld [vmem:[#allocation3 + $0x1e8] sm:$0xff]  ;;  %v1170_v6 = vpack.c.bf16 %v132_v62, %v128_v61  ;;  %v158_v8 = vld [vmem:[#allocation3 + $0x1c0] sm:$0xff]  ;;  %1169 = vmatprep.subr.bf16.mxu1 %v1168_v60  ;;  %v1172_v9 = vpack.c.bf16 %v141_v3, %v137_v2  ;;  %v136_v10 = vld [vmem:[#allocation3 + $0x110] sm:$0xff] }
  0x5d   :  { %1139 = vmatpush1.bf16.msra.mxu0 %v1138_v30  ;;  %v140_v11 = vld [vmem:[#allocation3 + $0x130] sm:$0xff]  ;;  %v1152_v12 = vpack.c.bf16 %v163_v5, %v159_v4  ;;  %v162_v13 = vld [vmem:[#allocation3 + $0x1e0] sm:$0xff]  ;;  %v145_v14 = vld [vmem:[#allocation3 + $0x158] sm:$0xff] }
  0x5e   :  { %1141 = vmatprep.subr.bf16.mxu0 %v1140_v36  ;;  %v149_v15 = vld [vmem:[#allocation3 + $0x178] sm:$0xff]  ;;  %v1174_v16 = vpack.c.bf16 %v140_v11, %v136_v10  ;;  %v1154_v17 = vpack.c.bf16 %v162_v13, %v158_v8  ;;  %v144_v19 = vld [vmem:[#allocation3 + $0x150] sm:$0xff]  ;;  %v100_v22 = vld [vmem:[%s1814_s0] sm:$0xff] }
  0x5f   :  { %1171 = vmatpush1.bf16.msra.mxu1 %v1170_v6  ;;  %v1176_v18 = vpack.c.bf16 %v149_v15, %v145_v14  ;;  %v148_v20 = vld [vmem:[#allocation3 + $0x170] sm:$0xff]  ;;  %v101_v23 = vld [vmem:[%s1814_s0 + $0x8] sm:$0xff]  ;;  %v153_v24 = vld [vmem:[#allocation3 + $0x198] sm:$0xff] }
  0x60   :  { %1173 = vmatprep.subr.bf16.mxu1 %v1172_v9  ;;  %v1178_v21 = vpack.c.bf16 %v148_v20, %v144_v19  ;;  %v157_v25 = vld [vmem:[#allocation3 + $0x1b8] sm:$0xff]  ;;  %v152_v27 = vld [vmem:[#allocation3 + $0x190] sm:$0xff]  ;;  %v364_v36 = vld [vmem:[%s1817_s3] sm:$0xff] }
  0x61   :  { %1143 = vmatpush1.bf16.msra.mxu0 %v1142_v46  ;;  %v1180_v26 = vpack.c.bf16 %v157_v25, %v153_v24  ;;  %v156_v28 = vld [vmem:[#allocation3 + $0x1b0] sm:$0xff]  ;;  %v161_v30 = vld [vmem:[#allocation3 + $0x1d8] sm:$0xff]  ;;  %v454_v37 = vld [vmem:[%s1818_s4] sm:$0xff] }
  0x62   :  { %1145 = vmatprep.subr.bf16.mxu0 %v1144_v51  ;;  %v1182_v29 = vpack.c.bf16 %v156_v28, %v152_v27  ;;  %v165_v31 = vld [vmem:[#allocation3 + $0x1f8] sm:$0xff]  ;;  %v160_v33 = vld [vmem:[#allocation3 + $0x1d0] sm:$0xff]  ;;  %v548_v38 = vld [vmem:[%s1819_s5] sm:$0xff] }
  0x63   :  { %1175 = vmatpush1.bf16.msra.mxu1 %v1174_v16  ;;  %v1184_v32 = vpack.c.bf16 %v165_v31, %v161_v30  ;;  %v164_v34 = vld [vmem:[#allocation3 + $0x1f0] sm:$0xff]  ;;  %v549_v39 = vld [vmem:[%s1819_s5 + $0x8] sm:$0xff]  ;;  %682 = vperm.xlu0 %1338, %v548_v38   ;;  %v550_v41 = vld [vmem:[%s1820_s6] sm:$0xff] }
  0x64   :  { %1177 = vmatprep.subr.bf16.mxu1 %v1176_v18  ;;  %v1186_v35 = vpack.c.bf16 %v164_v34, %v160_v33  ;;  %687 = vperm.xlu1 %1339, %v549_v39   ;;  %v551_v42 = vld [vmem:[%s1820_s6 + $0x8] sm:$0xff]  ;;  %v1701_v46 = vld [vmem:[#allocation6] sm:$0xf]  ;;  %v554_v6 = vld [vmem:[#allocation8 + $0x10] sm:$0xff] }
  0x65   :  { %1147 = vmatpush1.bf16.msra.mxu0 %v1146_v58  ;;  %v171_v48 = vrot.slane %v1701_v46, %v170_v45  ;;  %v175_v49 = vrot.slane %v1701_v46, %v174_v47  ;;  %v553_v60 = vld [vmem:[#allocation8 + $0x8] sm:$0xff]  ;;  %v555_v61 = vld [vmem:[#allocation8 + $0x18] sm:$0xff]  ;;  %v552_v5 = vld [vmem:[#allocation8] sm:$0xff] }
  0x66   :  { %1149 = vmatprep.subr.bf16.mxu0 %v1148_v63  ;;  %v585_v63 = vld [vmem:[#allocation8 + $0x108] sm:$0xff]  ;;  %v587_v1 = vld [vmem:[#allocation8 + $0x118] sm:$0xff]  ;;  %v1196_v4 = vpack.c.bf16 %v555_v61, %v553_v60  ;;  %v586_v10 = vld [vmem:[#allocation8 + $0x110] sm:$0xff] }
  0x67   :  { %1179 = vmatpush1.bf16.msra.mxu1 %v1178_v21  ;;  %696 = vperm.xlu0 %1338, %v550_v41   ;;  %v1228_v9 = vpack.c.bf16 %v587_v1, %v585_v63  ;;  %v557_v11 = vld [vmem:[#allocation8 + $0x28] sm:$0xff]  ;;  %v591_v14 = vld [vmem:[#allocation8 + $0x138] sm:$0xff]  ;;  %v556_v20 = vld [vmem:[#allocation8 + $0x20] sm:$0xff] }
  0x68   :  { %1181 = vmatprep.subr.bf16.mxu1 %v1180_v26  ;;  %701 = vperm.xlu1 %1339, %v551_v42   ;;  %v589_v13 = vld [vmem:[#allocation8 + $0x128] sm:$0xff]  ;;  %v558_v21 = vld [vmem:[#allocation8 + $0x30] sm:$0xff]  ;;  %v563_v26 = vld [vmem:[#allocation8 + $0x58] sm:$0xff] }
  0x69   :  { %1151 = vmatpush1.bf16.msra.mxu0 %v1150_v7  ;;  %v584_v7 = vld [vmem:[#allocation8 + $0x100] sm:$0xff]  ;;  %v590_v24 = vld [vmem:[#allocation8 + $0x130] sm:$0xff]  ;;  %v561_v25 = vld [vmem:[#allocation8 + $0x48] sm:$0xff] }
  0x6a   :  { %1153 = vmatprep.subr.bf16.mxu0 %v1152_v12  ;;  %v559_v12 = vld [vmem:[#allocation8 + $0x38] sm:$0xff]  ;;  %v365_v15 = vld [vmem:[%s1817_s3 + $0x8] sm:$0xff]  ;;  %v1230_v18 = vpack.c.bf16 %v586_v10, %v584_v7  ;;  %v1204_v31 = vpack.c.bf16 %v563_v26, %v561_v25  ;;  %v562_v33 = vld [vmem:[#allocation8 + $0x50] sm:$0xff]  ;;  %v178_v26 = vsub.s32 2, %v1698_v44  ;;  %s1538_s3 = smov [#allocation12]  }
  0x6b   :  { %1183 = vmatpush1.bf16.msra.mxu1 %v1182_v29  ;;  %v455_v16 = vld [vmem:[%s1818_s4 + $0x8] sm:$0xff]  ;;  %v1200_v19 = vpack.c.bf16 %v559_v12, %v557_v11  ;;  %v595_v28 = vld [vmem:[#allocation8 + $0x158] sm:$0xff]  ;;  %v1202_v29 = vpack.c.bf16 %v558_v21, %v556_v20  ;;  %v566_v47 = vld [vmem:[#allocation8 + $0x70] sm:$0xff]  ;;  %s1049_s4 = sshll.u32 %s1538_s3, 4  ;;  %s1050_s4 = int_to_ptr.vmem [resolvable:$true] %s1049_s4 }
  0x6c   :  { %1185 = vmatprep.subr.bf16.mxu1 %v1184_v32  ;;  %v593_v27 = vld [vmem:[#allocation8 + $0x148] sm:$0xff]  ;;  %v560_v32 = vld [vmem:[#allocation8 + $0x40] sm:$0xff]  ;;  %v567_v38 = vld [vmem:[#allocation8 + $0x78] sm:$0xff]  ;;  %s1428_s30 = scalar_lea.vmem %s1050_s4, 512  ;;  %p1433_p5 = scmp.lt.s32.totalorder %s1050_s4, %s1050_s4 }
  0x6d   :  { %1155 = vmatpush1.bf16.msra.mxu0 %v1154_v17  ;;  %v1198_v17 = vpack.c.bf16 %v554_v6, %v552_v5  ;;  %v592_v34 = vld [vmem:[#allocation8 + $0x140] sm:$0xff]  ;;  %v597_v39 = vld [vmem:[#allocation8 + $0x168] sm:$0xff]  ;;  %v599_v40 = vld [vmem:[#allocation8 + $0x178] sm:$0xff]  ;;  %v1206_v41 = vpack.c.bf16 %v562_v33, %v560_v32  ;;  %p1429_p4 = scmp.ne.s32.totalorder %s1050_s4, %s1428_s30  ;;  %p1434_p6 = scmp.lt.s32.totalorder %s1428_s30, %s1428_s30 }
  0x6e   :  { %v564_v45 = vld [vmem:[#allocation8 + $0x60] sm:$0xff]  ;;  %v573_v63 = vld [vmem:[#allocation8 + $0xa8] sm:$0xff]  ;;  %v575_v1 = vld [vmem:[#allocation8 + $0xb8] sm:$0xff] }
  0x6f   :  { %1187 = vmatpush1.bf16.msra.mxu1 %v1186_v35  ;;  %v1236_v35 = vpack.c.bf16 %v595_v28, %v593_v27  ;;  %v600_v60 = vld [vmem:[#allocation8 + $0x180] sm:$0xff]  ;;  %v1216_v6 = vpack.c.bf16 %v575_v1, %v573_v63  ;;  %v606_v11 = vld [vmem:[#allocation8 + $0x1b0] sm:$0xff]  ;;  %v577_v12 = vld [vmem:[#allocation8 + $0xc8] sm:$0xff]  ;;  %v182_v27 = vsub.s32 3, %v1698_v44  ;;  %v179_v28 = vrot.slane %v1701_v46, %v178_v26  ;;  %p1435_p7 = por %p1434_p6, %p1433_p5 }
  0x70   :  { %253 = vmatmul.mubr.f32.vlgmr.msra.gmra.mrb[0].mxu0 %v100_v22  ;;  %v572_v7 = vld [vmem:[#allocation8 + $0xa0] sm:$0xff]  ;;  %v578_v20 = vld [vmem:[#allocation8 + $0xd0] sm:$0xff] }
  0x71   :  { %258 = vmatprep.mubr.f32.mxu0 %v1536_v0  ;;  %p1436_p8 = pnand %p1435_p7, %p1429_p4 }
  0x72   :  { %330 = vmatmul.mubr.f32.vlgmr.msra.gmra.mrb[0].mxu1 %v100_v22  ;;  %v588_v22 = vld [vmem:[#allocation8 + $0x120] sm:$0xff] }
  0x73   :  { %335 = vmatprep.mubr.f32.mxu1 %v1536_v0  ;;  %v1234_v30 = vpack.c.bf16 %v590_v24, %v588_v22  ;;  %v608_v22 = vld [vmem:[#allocation8 + $0x1c0] sm:$0xff] }
  0x74   :  { %259 = vmatmul.mubr.f32.gmra.mrb[2].mxu0 %v101_v23 }
  0x75   :  { %1114 = vmatprep.mubr.msk.f32.mxu0 %vm366_vm0, %v364_v36  ;;  %v594_v36 = vld [vmem:[#allocation8 + $0x150] sm:$0xff] }
  0x76   :  { %336 = vmatmul.mubr.f32.gmra.mrb[2].mxu1 %v101_v23  ;;  %v1232_v23 = vpack.c.bf16 %v591_v14, %v589_v13  ;;  %v1238_v42 = vpack.c.bf16 %v594_v36, %v592_v34  ;;  %v579_v13 = vld [vmem:[#allocation8 + $0xd8] sm:$0xff]  ;;  %v609_v14 = vld [vmem:[#allocation8 + $0x1c8] sm:$0xff] }
  0x77   :  { %1121 = vmatprep.mubr.msk.f32.mxu1 %vm366_vm0, %v454_v37  ;;  %v565_v37 = vld [vmem:[#allocation8 + $0x68] sm:$0xff] }
  0x78   :  { %v1208_v43 = vpack.c.bf16 %v567_v38, %v565_v37 }
  0xe2   :  { %v683_v1 = vpop.permute.xlu0 %682 }
 0x143   :  { %v254_v50 = vpop.f32.mrb[0].mxu0 }
 0x144   :  { %v255_v51 = vadd.f32 %v254_v50, %v171_v48  ;;  %v256_v52 = vpop.f32.mrb[1].mxu0  ;;  %v598_v50 = vld [vmem:[#allocation8 + $0x170] sm:$0xff] }
 0x145   :  { %v257_v53 = vadd.f32 %v256_v52, %v175_v49  ;;  %v571_v52 = vld [vmem:[#allocation8 + $0x98] sm:$0xff] }
 0x146   :  { %v342_v54 = vmax.f32 %v255_v51, 0.0  ;;  %v569_v51 = vld [vmem:[#allocation8 + $0x88] sm:$0xff] }
 0x147   :  { %v343_v55 = vmax.f32 %v257_v53, 0.0  ;;  %v260_v56 = vpop.f32.mrb[2].mxu0  ;;  %v601_v53 = vld [vmem:[#allocation8 + $0x188] sm:$0xff] }
 0x148   :  { %354 = vst [vmem:[#allocation11] sm:$0xff] %v342_v54  ;;  %v261_v57 = vadd.f32 %v260_v56, %v171_v48  ;;  %v262_v58 = vpop.f32.mrb[3].mxu0  ;;  %v596_v48 = vld [vmem:[#allocation8 + $0x160] sm:$0xff] }
 0x149   :  { %355 = vst [vmem:[#allocation11 + $0x8] sm:$0xff] %v343_v55  ;;  %v263_v59 = vadd.f32 %v262_v58, %v175_v49  ;;  %v1240_v49 = vpack.c.bf16 %v599_v40, %v597_v39  ;;  %v1242_v56 = vpack.c.bf16 %v598_v50, %v596_v48  ;;  %v568_v58 = vld [vmem:[#allocation8 + $0x80] sm:$0xff]  ;;  %v582_v48 = vld [vmem:[#allocation8 + $0xf0] sm:$0xff] }
 0x14a   :  { %v344_v62 = vmax.f32 %v261_v57, 0.0  ;;  %v1212_v57 = vpack.c.bf16 %v571_v52, %v569_v51  ;;  %v615_v51 = vld [vmem:[#allocation8 + $0x1f8] sm:$0xff]  ;;  %v612_v52 = vld [vmem:[#allocation8 + $0x1e0] sm:$0xff] }
 0x14b   :  { %v345_v2 = vmax.f32 %v263_v59, 0.0  ;;  %v570_v59 = vld [vmem:[#allocation8 + $0x90] sm:$0xff] }
 0x14c   :  { %356 = vst [vmem:[#allocation11 + $0x10] sm:$0xff] %v344_v62  ;;  %v1188_v3 = vpack.c.bf16 %v344_v62, %v342_v54  ;;  %v603_v54 = vld [vmem:[#allocation8 + $0x198] sm:$0xff]  ;;  %v602_v62 = vld [vmem:[#allocation8 + $0x190] sm:$0xff] }
 0x14d   :  { %357 = vst [vmem:[#allocation11 + $0x18] sm:$0xff] %v345_v2  ;;  %v1192_v8 = vpack.c.bf16 %v345_v2, %v343_v55  ;;  %v1210_v55 = vpack.c.bf16 %v566_v47, %v564_v45  ;;  %v1244_v61 = vpack.c.bf16 %v603_v54, %v601_v53  ;;  %v605_v2 = vld [vmem:[#allocation8 + $0x1a8] sm:$0xff]  ;;  %v1246_v5 = vpack.c.bf16 %v602_v62, %v600_v60  ;;  %v580_v47 = vld [vmem:[#allocation8 + $0xe0] sm:$0xff]  ;;  %v614_v53 = vld [vmem:[#allocation8 + $0x1f0] sm:$0xff] }
 0x14e   :  { %1189 = vmatprep.subr.bf16.mxu0 %v1188_v3  ;;  %v1226_v50 = vpack.c.bf16 %v582_v48, %v580_v47  ;;  %v651_v62 = vld [vmem:[#allocation9 + $0x118] sm:$0xff]  ;;  %v661_v48 = vld [vmem:[#allocation9 + $0x168] sm:$0xff] }
 0x14f   :  { %1191 = vmatpush3.bf16.msra.mxu0 %v1188_v3  ;;  %1193 = vmatprep.subr.bf16.mxu1 %v1192_v8  ;;  %v607_v3 = vld [vmem:[#allocation8 + $0x1b8] sm:$0xff] }
 0x150   :  { %1195 = vmatpush3.bf16.msra.mxu1 %v1192_v8  ;;  %1197 = vmatprep.subr.bf16.mxu0 %v1196_v4  ;;  %v1214_v4 = vpack.c.bf16 %v570_v59, %v568_v58  ;;  %v574_v8 = vld [vmem:[#allocation8 + $0xb0] sm:$0xff]  ;;  %v1248_v10 = vpack.c.bf16 %v607_v3, %v605_v2  ;;  %v617_v58 = vld [vmem:[#allocation9 + $0x8] sm:$0xff]  ;;  %v619_v59 = vld [vmem:[#allocation9 + $0x18] sm:$0xff]  ;;  %v688_v2 = vpop.permute.xlu1 %687 }
 0x151   :  { %1229 = vmatprep.subr.bf16.mxu1 %v1228_v9  ;;  %v604_v9 = vld [vmem:[#allocation8 + $0x1a0] sm:$0xff]  ;;  %v1260_v60 = vpack.c.bf16 %v619_v59, %v617_v58  ;;  %v631_v47 = vld [vmem:[#allocation9 + $0x78] sm:$0xff]  ;;  %v665_v59 = vld [vmem:[#allocation9 + $0x188] sm:$0xff] }
 0x152   :  { %1115 = vmatmul.mubr.msk.f32.vlgmr.msra.gmra.mrb[4].mxu0 %vm366_vm0, %v365_v15  ;;  %v611_v15 = vld [vmem:[#allocation8 + $0x1d8] sm:$0xff] }
 0x153   :  { %1122 = vmatmul.mubr.msk.f32.vlgmr.msra.gmra.mrb[4].mxu1 %vm366_vm0, %v455_v16  ;;  %1199 = vmatpush1.bf16.msra.mxu0 %v1198_v17  ;;  %v1218_v16 = vpack.c.bf16 %v574_v8, %v572_v7  ;;  %v1250_v17 = vpack.c.bf16 %v606_v11, %v604_v9  ;;  %v1252_v21 = vpack.c.bf16 %v611_v15, %v609_v14  ;;  %v648_v9 = vld [vmem:[#allocation9 + $0x100] sm:$0xff]  ;;  %v621_v14 = vld [vmem:[#allocation9 + $0x28] sm:$0xff]  ;;  %v623_v15 = vld [vmem:[#allocation9 + $0x38] sm:$0xff] }
 0x154   :  { %1231 = vmatpush1.bf16.msra.mxu1 %v1230_v18  ;;  %1201 = vmatprep.subr.bf16.mxu0 %v1200_v19  ;;  %v1220_v18 = vpack.c.bf16 %v579_v13, %v577_v12  ;;  %v576_v19 = vld [vmem:[#allocation8 + $0xc0] sm:$0xff]  ;;  %v702_v13 = vpop.permute.xlu1 %701  ;;  %v635_v58 = vld [vmem:[#allocation9 + $0x98] sm:$0xff] }
 0x155   :  { %1233 = vmatprep.subr.bf16.mxu1 %v1232_v23  ;;  %772 = vmatprep.mubr.f32.mxu0 %v1536_v0  ;;  %v610_v23 = vld [vmem:[#allocation8 + $0x1d0] sm:$0xff]  ;;  %v1222_v24 = vpack.c.bf16 %v578_v20, %v576_v19  ;;  %v655_v19 = vld [vmem:[#allocation9 + $0x138] sm:$0xff] }
 0x156   :  { %853 = vmatprep.mubr.f32.mxu1 %v1536_v0  ;;  %v1254_v25 = vpack.c.bf16 %v610_v23, %v608_v22  ;;  %v620_v23 = vld [vmem:[#allocation9 + $0x20] sm:$0xff] }
 0x157   :  { %1203 = vmatpush1.bf16.msra.mxu0 %v1202_v29  ;;  %v183_v29 = vrot.slane %v1701_v46, %v182_v27  ;;  %v613_v46 = vld [vmem:[#allocation8 + $0x1e8] sm:$0xff] }
 0x158   :  { %1235 = vmatpush1.bf16.msra.mxu1 %v1234_v30  ;;  %1205 = vmatprep.subr.bf16.mxu0 %v1204_v31  ;;  %v331_v30 = vpop.f32.mrb[0].mxu1 }
 0x159   :  { %1237 = vmatprep.subr.bf16.mxu1 %v1236_v35  ;;  %v332_v31 = vadd.f32 %v331_v30, %v179_v28  ;;  %v333_v32 = vpop.f32.mrb[1].mxu1  ;;  %v625_v30 = vld [vmem:[#allocation9 + $0x48] sm:$0xff] }
 0x15a   :  { %v334_v33 = vadd.f32 %v333_v32, %v183_v29  ;;  %v337_v36 = vpop.f32.mrb[2].mxu1 }
 0x15b   :  { %1207 = vmatpush1.bf16.msra.mxu0 %v1206_v41  ;;  %v346_v34 = vmax.f32 %v332_v31, 0.0  ;;  %v338_v38 = vadd.f32 %v337_v36, %v179_v28  ;;  %v339_v39 = vpop.f32.mrb[3].mxu1  ;;  %v1264_v28 = vpack.c.bf16 %v623_v15, %v621_v14  ;;  %v627_v31 = vld [vmem:[#allocation9 + $0x58] sm:$0xff]  ;;  %v636_v14 = vld [vmem:[#allocation9 + $0xa0] sm:$0xff]  ;;  %v638_v15 = vld [vmem:[#allocation9 + $0xb0] sm:$0xff] }
 0x15c   :  { %1239 = vmatpush1.bf16.msra.mxu1 %v1238_v42  ;;  %1209 = vmatprep.subr.bf16.mxu0 %v1208_v43  ;;  %v347_v35 = vmax.f32 %v334_v33, 0.0  ;;  %v340_v41 = vadd.f32 %v339_v39, %v183_v29  ;;  %v581_v42 = vld [vmem:[#allocation8 + $0xe8] sm:$0xff]  ;;  %v583_v43 = vld [vmem:[#allocation8 + $0xf8] sm:$0xff]  ;;  %v654_v29 = vld [vmem:[#allocation9 + $0x130] sm:$0xff] }
 0x15d   :  { %1241 = vmatprep.subr.bf16.mxu1 %v1240_v49  ;;  %v350_v37 = vmin.f32 %v346_v34, 6.0  ;;  %v348_v44 = vmax.f32 %v338_v38, 0.0  ;;  %v1224_v45 = vpack.c.bf16 %v583_v43, %v581_v42  ;;  %v657_v33 = vld [vmem:[#allocation9 + $0x148] sm:$0xff]  ;;  %v659_v34 = vld [vmem:[#allocation9 + $0x158] sm:$0xff]  ;;  %v1268_v38 = vpack.c.bf16 %v627_v31, %v625_v30  ;;  %v624_v39 = vld [vmem:[#allocation9 + $0x40] sm:$0xff] }
 0x15e   :  { %v351_v40 = vmin.f32 %v347_v35, 6.0  ;;  %v349_v49 = vmax.f32 %v340_v41, 0.0  ;;  %v656_v41 = vld [vmem:[#allocation9 + $0x140] sm:$0xff]  ;;  %v1300_v43 = vpack.c.bf16 %v659_v34, %v657_v33 }
 0x15f   :  { %1211 = vmatpush1.bf16.msra.mxu0 %v1210_v55  ;;  %358 = vst [vmem:[#allocation12] sm:$0xff] %v350_v37  ;;  %v352_v54 = vmin.f32 %v348_v44, 6.0  ;;  %v1256_v55 = vpack.c.bf16 %v615_v51, %v613_v46  ;;  %v658_v44 = vld [vmem:[#allocation9 + $0x150] sm:$0xff]  ;;  %v663_v46 = vld [vmem:[#allocation9 + $0x178] sm:$0xff]  ;;  %v640_v31 = vld [vmem:[#allocation9 + $0xc0] sm:$0xff] }
 0x160   :  { %1243 = vmatpush1.bf16.msra.mxu1 %v1242_v56  ;;  %1213 = vmatprep.subr.bf16.mxu0 %v1212_v57  ;;  %359 = vst [vmem:[#allocation12 + $0x8] sm:$0xff] %v351_v40  ;;  %v1258_v56 = vpack.c.bf16 %v614_v53, %v612_v52  ;;  %v353_v57 = vmin.f32 %v349_v49, 6.0  ;;  %v626_v40 = vld [vmem:[#allocation9 + $0x50] sm:$0xff]  ;;  %v628_v52 = vld [vmem:[#allocation9 + $0x60] sm:$0xff] }
 0x161   :  { %1245 = vmatprep.subr.bf16.mxu1 %v1244_v61  ;;  %360 = vst [vmem:[#allocation12 + $0x10] sm:$0xff] %v352_v54  ;;  %v649_v61 = vld [vmem:[#allocation9 + $0x108] sm:$0xff]  ;;  %v1270_v49 = vpack.c.bf16 %v626_v40, %v624_v39  ;;  %v630_v53 = vld [vmem:[#allocation9 + $0x70] sm:$0xff]  ;;  %v660_v54 = vld [vmem:[#allocation9 + $0x160] sm:$0xff] }
 0x162   :  { %361 = vst [vmem:[#allocation12 + $0x18] sm:$0xff] %v353_v57  ;;  %v1292_v63 = vpack.c.bf16 %v651_v62, %v649_v61  ;;  %v633_v57 = vld [vmem:[#allocation9 + $0x88] sm:$0xff]  ;;  %v1274_v61 = vpack.c.bf16 %v630_v53, %v628_v52  ;;  %v672_v33 = vld [vmem:[#allocation9 + $0x1c0] sm:$0xff]  ;;  %v679_v40 = vld [vmem:[#allocation9 + $0x1f8] sm:$0xff] }
 0x163   :  { %1215 = vmatpush1.bf16.msra.mxu0 %v1214_v4  ;;  %v697_v4 = vpop.permute.xlu0 %696  ;;  %v677_v39 = vld [vmem:[#allocation9 + $0x1e8] sm:$0xff] }
 0x164   :  { %1247 = vmatpush1.bf16.msra.mxu1 %v1246_v5  ;;  %1217 = vmatprep.subr.bf16.mxu0 %v1216_v6  ;;  %v616_v5 = vld [vmem:[#allocation9] sm:$0xff]  ;;  %v618_v6 = vld [vmem:[#allocation9 + $0x10] sm:$0xff] }
 0x165   :  { %1249 = vmatprep.subr.bf16.mxu1 %v1248_v10  ;;  %v650_v10 = vld [vmem:[#allocation9 + $0x110] sm:$0xff] }
 0x166   :  { %v1294_v22 = vpack.c.bf16 %v650_v10, %v648_v9  ;;  %v671_v9 = vld [vmem:[#allocation9 + $0x1b8] sm:$0xff] }
 0x167   :  { %1219 = vmatpush1.bf16.msra.mxu0 %v1218_v16 }
 0x168   :  { %1251 = vmatpush1.bf16.msra.mxu1 %v1250_v17  ;;  %1221 = vmatprep.subr.bf16.mxu0 %v1220_v18  ;;  %v1262_v17 = vpack.c.bf16 %v618_v6, %v616_v5  ;;  %v653_v18 = vld [vmem:[#allocation9 + $0x128] sm:$0xff]  ;;  %v666_v5 = vld [vmem:[#allocation9 + $0x190] sm:$0xff] }
 0x169   :  { %1253 = vmatprep.subr.bf16.mxu1 %v1252_v21  ;;  %v1296_v32 = vpack.c.bf16 %v655_v19, %v653_v18  ;;  %v637_v6 = vld [vmem:[#allocation9 + $0xa8] sm:$0xff]  ;;  %v670_v19 = vld [vmem:[#allocation9 + $0x1b0] sm:$0xff] }
 0x16b   :  { %1223 = vmatpush1.bf16.msra.mxu0 %v1222_v24  ;;  %v622_v24 = vld [vmem:[#allocation9 + $0x30] sm:$0xff] }
 0x16c   :  { %1255 = vmatpush1.bf16.msra.mxu1 %v1254_v25  ;;  %1225 = vmatprep.subr.bf16.mxu0 %v1224_v45  ;;  %v652_v25 = vld [vmem:[#allocation9 + $0x120] sm:$0xff]  ;;  %v1266_v35 = vpack.c.bf16 %v622_v24, %v620_v23  ;;  %v629_v45 = vld [vmem:[#allocation9 + $0x68] sm:$0xff]  ;;  %v643_v23 = vld [vmem:[#allocation9 + $0xd8] sm:$0xff] }
 0x16d   :  { %1257 = vmatprep.subr.bf16.mxu1 %v1256_v55  ;;  %v1298_v37 = vpack.c.bf16 %v654_v29, %v652_v25  ;;  %v1272_v51 = vpack.c.bf16 %v631_v47, %v629_v45  ;;  %v1304_v55 = vpack.c.bf16 %v663_v46, %v661_v48  ;;  %v673_v24 = vld [vmem:[#allocation9 + $0x1c8] sm:$0xff]  ;;  %v675_v25 = vld [vmem:[#allocation9 + $0x1d8] sm:$0xff]  ;;  %v644_v45 = vld [vmem:[#allocation9 + $0xe0] sm:$0xff]  ;;  %v1320_v48 = vpack.c.bf16 %v679_v40, %v677_v39 }
 0x16e   :  { %v1316_v34 = vpack.c.bf16 %v675_v25, %v673_v24  ;;  %v646_v47 = vld [vmem:[#allocation9 + $0xf0] sm:$0xff]  ;;  %v676_v46 = vld [vmem:[#allocation9 + $0x1e0] sm:$0xff] }
 0x16f   :  { %1227 = vmatpush1.bf16.msra.mxu0 %v1226_v50  ;;  %v1302_v50 = vpack.c.bf16 %v658_v44, %v656_v41 }
 0x170   :  { %1259 = vmatpush1.bf16.msra.mxu1 %v1258_v56  ;;  %1261 = vmatprep.subr.bf16.mxu0 %v1260_v60  ;;  %v662_v56 = vld [vmem:[#allocation9 + $0x170] sm:$0xff]  ;;  %v667_v60 = vld [vmem:[#allocation9 + $0x198] sm:$0xff] }
 0x171   :  { %1293 = vmatprep.subr.bf16.mxu1 %v1292_v63  ;;  %v1306_v62 = vpack.c.bf16 %v662_v56, %v660_v54  ;;  %v1276_v63 = vpack.c.bf16 %v635_v58, %v633_v57 }
 0x225   :  { %v1116_v3 = vpop.f32.mrb[4].mxu0 }
 0x226   :  { %v439_v7 = vpop.f32.mrb[5].mxu0  ;;  %v1123_v8 = vpop.f32.mrb[4].mxu1  ;;  %v1725_v21 = vmul.f32 %v1116_v3, %v688_v2  ;;  %v634_v2 = vld [vmem:[#allocation9 + $0x90] sm:$0xff]  ;;  %v664_v3 = vld [vmem:[#allocation9 + $0x180] sm:$0xff] }
 0x227   :  { %v1720_v11 = vmul.f32 %v683_v1, %v439_v7  ;;  %v528_v12 = vpop.f32.mrb[5].mxu1  ;;  %v1728_v27 = vmul.f32 %v1123_v8, %v702_v13  ;;  %v632_v1 = vld [vmem:[#allocation9 + $0x80] sm:$0xff]  ;;  %v639_v7 = vld [vmem:[#allocation9 + $0xb8] sm:$0xff]  ;;  %v669_v8 = vld [vmem:[#allocation9 + $0x1a8] sm:$0xff] }
 0x228   :  { %v1722_v16 = vmul.f32 %v697_v4, %v528_v12  ;;  %v693_v36 = vmax.f32 %v1725_v21, 0.0  ;;  %v1308_v4 = vpack.c.bf16 %v667_v60, %v665_v59  ;;  %v1278_v10 = vpack.c.bf16 %v634_v2, %v632_v1 }
 0x229   :  { %v692_v20 = vmax.f32 %v1720_v11, 0.0  ;;  %v707_v42 = vmax.f32 %v1728_v27, 0.0  ;;  %v1310_v12 = vpack.c.bf16 %v666_v5, %v664_v3  ;;  %v1280_v13 = vpack.c.bf16 %v639_v7, %v637_v6 }
 0x22a   :  { %v706_v26 = vmax.f32 %v1722_v16, 0.0  ;;  %v1312_v18 = vpack.c.bf16 %v671_v9, %v669_v8 }
 0x22b   :  { %773 = vmatmul.mubr.f32.vlgmr.msra.gmra.mrb[6].mxu0 %v692_v20 }
 0x22c   :  { %1263 = vmatpush1.bf16.msra.mxu0 %v1262_v17  ;;  %854 = vmatmul.mubr.f32.vlgmr.msra.gmra.mrb[6].mxu1 %v706_v26  ;;  %v668_v17 = vld [vmem:[#allocation9 + $0x1a0] sm:$0xff] }
 0x22d   :  { %1295 = vmatpush1.bf16.msra.mxu1 %v1294_v22  ;;  %778 = vmatprep.mubr.f32.mxu0 %v1536_v0  ;;  %v641_v22 = vld [vmem:[#allocation9 + $0xc8] sm:$0xff]  ;;  %v1314_v29 = vpack.c.bf16 %v670_v19, %v668_v17 }
 0x22e   :  { %1265 = vmatprep.subr.bf16.mxu0 %v1264_v28  ;;  %859 = vmatprep.mubr.f32.mxu1 %v1536_v0  ;;  %v1282_v28 = vpack.c.bf16 %v638_v15, %v636_v14  ;;  %v1284_v30 = vpack.c.bf16 %v643_v23, %v641_v22 }
 0x22f   :  { %779 = vmatmul.mubr.f32.gmra.mrb[8].mxu0 %v693_v36  ;;  %1297 = vmatprep.subr.bf16.mxu1 %v1296_v32  ;;  %v642_v32 = vld [vmem:[#allocation9 + $0xd0] sm:$0xff] }
 0x230   :  { %1267 = vmatpush1.bf16.msra.mxu0 %v1266_v35  ;;  %860 = vmatmul.mubr.f32.gmra.mrb[8].mxu1 %v707_v42  ;;  %v674_v35 = vld [vmem:[#allocation9 + $0x1d0] sm:$0xff]  ;;  %v1286_v41 = vpack.c.bf16 %v642_v32, %v640_v31 }
 0x231   :  { %1299 = vmatpush1.bf16.msra.mxu1 %v1298_v37  ;;  %1269 = vmatprep.subr.bf16.mxu0 %v1268_v38  ;;  %v645_v37 = vld [vmem:[#allocation9 + $0xe8] sm:$0xff]  ;;  %v647_v38 = vld [vmem:[#allocation9 + $0xf8] sm:$0xff] }
 0x232   :  { %1301 = vmatprep.subr.bf16.mxu1 %v1300_v43  ;;  %934 = vmatprep.mubr.f32.mxu0 %v1536_v0  ;;  %v1318_v43 = vpack.c.bf16 %v674_v35, %v672_v33  ;;  %v1288_v44 = vpack.c.bf16 %v647_v38, %v645_v37 }
 0x233   :  { %1015 = vmatprep.mubr.f32.mxu1 %v1536_v0 }
 0x234   :  { %1271 = vmatpush1.bf16.msra.mxu0 %v1270_v49  ;;  %v678_v49 = vld [vmem:[#allocation9 + $0x1f0] sm:$0xff] }
 0x235   :  { %1303 = vmatpush1.bf16.msra.mxu1 %v1302_v50  ;;  %1273 = vmatprep.subr.bf16.mxu0 %v1272_v51  ;;  %v1290_v50 = vpack.c.bf16 %v646_v47, %v644_v45  ;;  %v1322_v51 = vpack.c.bf16 %v678_v49, %v676_v46 }
 0x236   :  { %1305 = vmatprep.subr.bf16.mxu1 %v1304_v55 }
 0x238   :  { %1275 = vmatpush1.bf16.msra.mxu0 %v1274_v61 }
 0x239   :  { %1307 = vmatpush1.bf16.msra.mxu1 %v1306_v62  ;;  %1277 = vmatprep.subr.bf16.mxu0 %v1276_v63 }
 0x23a   :  { %1309 = vmatprep.subr.bf16.mxu1 %v1308_v4 }
 0x23c   :  { %1279 = vmatpush1.bf16.msra.mxu0 %v1278_v10 }
 0x23d   :  { %1311 = vmatpush1.bf16.msra.mxu1 %v1310_v12  ;;  %1281 = vmatprep.subr.bf16.mxu0 %v1280_v13 }
 0x23e   :  { %1313 = vmatprep.subr.bf16.mxu1 %v1312_v18 }
 0x240   :  { %1283 = vmatpush1.bf16.msra.mxu0 %v1282_v28 }
 0x241   :  { %1315 = vmatpush1.bf16.msra.mxu1 %v1314_v29  ;;  %1285 = vmatprep.subr.bf16.mxu0 %v1284_v30 }
 0x242   :  { %1317 = vmatprep.subr.bf16.mxu1 %v1316_v34 }
 0x244   :  { %1287 = vmatpush1.bf16.msra.mxu0 %v1286_v41 }
 0x245   :  { %1319 = vmatpush1.bf16.msra.mxu1 %v1318_v43  ;;  %1289 = vmatprep.subr.bf16.mxu0 %v1288_v44 }
 0x246   :  { %1321 = vmatprep.subr.bf16.mxu1 %v1320_v48 }
 0x248   :  { %1291 = vmatpush1.bf16.msra.mxu0 %v1290_v50 }
 0x249   :  { %1323 = vmatpush1.bf16.msra.mxu1 %v1322_v51 }
 0x24b   :  { %935 = vmatmul.mubr.f32.vlgmr.msra.gmra.mrb[10].mxu0 %v692_v20 }
 0x24c   :  { %1016 = vmatmul.mubr.f32.vlgmr.msra.gmra.mrb[10].mxu1 %v706_v26  ;;  %940 = vmatprep.mubr.f32.mxu0 %v1536_v0 }
 0x24d   :  { %1021 = vmatprep.mubr.f32.mxu1 %v1536_v0 }
 0x24f   :  { %941 = vmatmul.mubr.f32.gmra.mrb[12].mxu0 %v693_v36 }
 0x250   :  { %1022 = vmatmul.mubr.f32.gmra.mrb[12].mxu1 %v707_v42 }
 0x251   :  { %1439 = shalt.err (!%p1436_p8)
}
 0x252   :  { %s1440_s17 = scalar_lea.hbm %s1824_s10, 512 }
 0x253   :  { %p1441_p9 = scmp.ne.s32.totalorder %s1824_s10, %s1440_s17  ;;  %p1444_p10 = scmp.lt.u32.totalorder %s1440_s17, %s1824_s10 }
 0x255   :  { %p1446_p11 = pnand %p1444_p10, %p1441_p9 }
 0x257   :  { %1449 = shalt.err (!%p1446_p11)
}
 0x258   :  { %1055 = dma.vmem_to_hbm [thread:$0]  %s1050_s4, 512, %s1824_s10, [#allocation13], %s1533_s1, %s1533_s1, %s1534_s24  }
 0x259   :  { %s1450_s25 = scalar_lea.vmem %s1038_s7, 512  ;;  %p1455_p13 = scmp.lt.s32.totalorder %s1038_s7, %s1038_s7 }
 0x25a   :  { %p1451_p12 = scmp.ne.s32.totalorder %s1038_s7, %s1450_s25  ;;  %p1456_p0 = scmp.lt.s32.totalorder %s1450_s25, %s1450_s25 }
 0x25c   :  { %p1457_p1 = por %p1456_p0, %p1455_p13 }
 0x25e   :  { %p1458_p2 = pnand %p1457_p1, %p1451_p12 }
 0x260   :  { %1461 = shalt.err (!%p1458_p2)
}
 0x261   :  { %s1462_s22 = scalar_lea.hbm %s1823_s9, 512 }
 0x262   :  { %p1463_p3 = scmp.ne.s32.totalorder %s1823_s9, %s1462_s22  ;;  %p1466_p4 = scmp.lt.u32.totalorder %s1462_s22, %s1823_s9 }
 0x264   :  { %p1468_p5 = pnand %p1466_p4, %p1463_p3 }
 0x266   :  { %1471 = shalt.err (!%p1468_p5)
}
 0x267   :  { %1043 = dma.vmem_to_hbm [thread:$0]  %s1038_s7, 512, %s1823_s9, [#allocation5], %s1533_s1, %s1533_s1, %s1534_s24  }
 0x268   :  { %s1540_s13 = smov [#allocation14]  }
 0x269   :  { %s1061_s14 = sshll.u32 %s1540_s13, 4  ;;  %s1062_s14 = int_to_ptr.vmem [resolvable:$true] %s1061_s14 }
 0x26a   :  { %s1472_s9 = scalar_lea.vmem %s1062_s14, 1024  ;;  %p1477_p7 = scmp.lt.s32.totalorder %s1062_s14, %s1062_s14 }
 0x26b   :  { %p1473_p6 = scmp.ne.s32.totalorder %s1062_s14, %s1472_s9  ;;  %p1478_p8 = scmp.lt.s32.totalorder %s1472_s9, %s1472_s9 }
 0x26d   :  { %p1479_p9 = por %p1478_p8, %p1477_p7 }
 0x26f   :  { %p1480_p10 = pnand %p1479_p9, %p1473_p6 }
 0x2fe   :  { %v774_v0 = vpop.f32.mrb[6].mxu0 }
 0x2ff   :  { %785 = vst [vmem:[#allocation14] sm:$0xff] %v774_v0  ;;  %v855_v11 = vpop.f32.mrb[6].mxu1  ;;  %v776_v16 = vpop.f32.mrb[7].mxu0 }
 0x300   :  { %866 = vst [vmem:[#allocation14 + $0x20] sm:$0xff] %v855_v11  ;;  %786 = vst [vmem:[#allocation14 + $0x8] sm:$0xff] %v776_v16  ;;  %v857_v20 = vpop.f32.mrb[7].mxu1 }
 0x301   :  { %867 = vst [vmem:[#allocation14 + $0x28] sm:$0xff] %v857_v20 }
 0x302   :  { %v780_v21 = vpop.f32.mrb[8].mxu0 }
 0x303   :  { %787 = vst [vmem:[#allocation14 + $0x10] sm:$0xff] %v780_v21  ;;  %v782_v26 = vpop.f32.mrb[9].mxu0  ;;  %v861_v27 = vpop.f32.mrb[8].mxu1 }
 0x304   :  { %788 = vst [vmem:[#allocation14 + $0x18] sm:$0xff] %v782_v26  ;;  %868 = vst [vmem:[#allocation14 + $0x30] sm:$0xff] %v861_v27  ;;  %v863_v36 = vpop.f32.mrb[9].mxu1 }
 0x305   :  { %869 = vst [vmem:[#allocation14 + $0x38] sm:$0xff] %v863_v36 }
 0x306   :  { %1483 = shalt.err (!%p1480_p10)
}
 0x307   :  { %s1484_s15 = scalar_lea.hbm %s1825_s11, 1024 }
 0x308   :  { %p1485_p11 = scmp.ne.s32.totalorder %s1825_s11, %s1484_s15  ;;  %p1488_p12 = scmp.lt.u32.totalorder %s1484_s15, %s1825_s11 }
 0x30a   :  { %p1490_p13 = pnand %p1488_p12, %p1485_p11 }
 0x30c   :  { %1493 = shalt.err (!%p1490_p13)
}
 0x30d   :  { %1067 = dma.vmem_to_hbm [thread:$0]  %s1062_s14, 1024, %s1825_s11, [#allocation13], %s1533_s1, %s1533_s1, %s1534_s24  }
 0x30e   :  { %s1541_s0 = smov [#allocation15]  }
 0x30f   :  { %s1073_s19 = sshll.u32 %s1541_s0, 4  ;;  %s1074_s19 = int_to_ptr.vmem [resolvable:$true] %s1073_s19 }
 0x310   :  { %s1494_s11 = scalar_lea.vmem %s1074_s19, 1024  ;;  %p1499_p1 = scmp.lt.s32.totalorder %s1074_s19, %s1074_s19 }
 0x311   :  { %p1495_p0 = scmp.ne.s32.totalorder %s1074_s19, %s1494_s11  ;;  %p1500_p2 = scmp.lt.s32.totalorder %s1494_s11, %s1494_s11 }
 0x313   :  { %p1501_p3 = por %p1500_p2, %p1499_p1 }
 0x315   :  { %p1502_p4 = pnand %p1501_p3, %p1495_p0 }
 0x31e   :  { %v936_v42 = vpop.f32.mrb[10].mxu0 }
 0x31f   :  { %947 = vst [vmem:[#allocation15] sm:$0xff] %v936_v42  ;;  %v938_v52 = vpop.f32.mrb[11].mxu0  ;;  %v1017_v53 = vpop.f32.mrb[10].mxu1 }
 0x320   :  { %948 = vst [vmem:[#allocation15 + $0x8] sm:$0xff] %v938_v52  ;;  %1028 = vst [vmem:[#allocation15 + $0x20] sm:$0xff] %v1017_v53  ;;  %v1019_v54 = vpop.f32.mrb[11].mxu1 }
 0x321   :  { %1029 = vst [vmem:[#allocation15 + $0x28] sm:$0xff] %v1019_v54 }
 0x322   :  { %v942_v55 = vpop.f32.mrb[12].mxu0 }
 0x323   :  { %949 = vst [vmem:[#allocation15 + $0x10] sm:$0xff] %v942_v55  ;;  %v944_v56 = vpop.f32.mrb[13].mxu0  ;;  %v1023_v57 = vpop.f32.mrb[12].mxu1 }
 0x324   :  { %950 = vst [vmem:[#allocation15 + $0x18] sm:$0xff] %v944_v56  ;;  %1030 = vst [vmem:[#allocation15 + $0x30] sm:$0xff] %v1023_v57  ;;  %v1025_v58 = vpop.f32.mrb[13].mxu1 }
 0x325   :  { %1031 = vst [vmem:[#allocation15 + $0x38] sm:$0xff] %v1025_v58 }
 0x326   :  { %1505 = shalt.err (!%p1502_p4)
}
 0x327   :  { %s1506_s23 = scalar_lea.hbm %s1826_s12, 1024 }
 0x328   :  { %p1507_p5 = scmp.ne.s32.totalorder %s1826_s12, %s1506_s23  ;;  %p1510_p6 = scmp.lt.u32.totalorder %s1506_s23, %s1826_s12 }
 0x32a   :  { %p1512_p7 = pnand %p1510_p6, %p1507_p5 }
 0x32c   :  { %1515 = shalt.err (!%p1512_p7)
}
 0x32d   :  { %1079 = dma.vmem_to_hbm [thread:$0]  %s1074_s19, 1024, %s1826_s12, [#allocation16], %s1533_s1, %s1533_s1, %s1534_s24  }
 0x32e   :  { %1522 = dma.done.wait [#allocation5], 512  }
 0x32f   :  { %1523 = vsyncadd [#allocation5], 4294966784 }
 0x330   :  { %1524 = dma.done.wait [#allocation13], 1536  }
 0x331   :  { %1525 = vsyncadd [#allocation13], 4294965760 }
 0x332   :  { %1526 = dma.done.wait [#allocation16], 1024  }
 0x333   :  { %1527 = vsyncadd [#allocation16], 4294966272 }
 0x334   :  { %1092 = vsyncpa [#allocation4], 1 }
 0x335   :  { %1093 = vsyncpa [#allocation7], 1 }
 0x336   :  { %1094 = vsyncpa [#allocation10], 1 }
 0x337   :  { %1095 = vsyncpa [#allocation5], 1 }
 0x338   :  { %1096 = vsyncpa [#allocation13], 1 }
 0x339   :  { %1097 = vsyncpa [#allocation16], 1 }

</bundles_post_ra>
